<compile_context>
chip_gen: v7x
topology: tpu7x:2x2x1
jax: 0.10.0
libtpu: 0.0.40
codegen_flags: <defaults>
</compile_context>

<pallas_src>
import functools

import numpy as np
import jax
import jax.numpy as jnp
from jax import lax
from jax.experimental import pallas as pl
from jax.experimental.pallas import tpu as pltpu

LANE = 128   # shared lane block: both LSTM directions packed into 128 lanes
FP = 128     # padded SAGE feature width (100 -> 128)


# ------------------------- BiLSTM kernel -------------------------

def bilstm_kernel(x_ref, wx_ref, wh_ref, b_ref, out_ref, h_ref, c_ref, gx_ref):
    """One T-chunk of the fused bidirectional LSTM (PyTorch gate order i,f,g,o).

    x_ref:   (Tc*Bp, 128) bf16   lanes [0:D]=x_t, [D:2D]=x_{T-1-t}
    wx_ref:  (128, 512)   bf16   input weights, both directions, gate-major
    wh_ref:  (128, 512)   bf16   recurrent weights, both directions
    b_ref:   (1, 512)     f32    bias (b_ih + b_hh), both directions
    out_ref: (Tc, Bp, 128) f32   lanes [0:H]=h_fwd(t), [H:2H]=h_bwd at pos T-1-t
    h_ref/c_ref: (Bp, 128) f32   carry across grid steps (VMEM scratch)
    gx_ref:  (Tc*Bp, 512) f32    hoisted input projection for this chunk
    """
    Tc, Bp, _ = out_ref.shape
    NG = wx_ref.shape[-1]
    GL = NG // 4                 # 128-lane gate block [fwd H | bwd H | pad]

    @pl.when(pl.program_id(0) == 0)
    def _():
        h_ref[...] = jnp.zeros_like(h_ref)
        c_ref[...] = jnp.zeros_like(c_ref)

    # Hoisted input projection + bias for the whole chunk: ONE MXU matmul.
    gx_ref[...] = (jnp.dot(x_ref[...], wx_ref[...],
                           preferred_element_type=jnp.float32) + b_ref[...])

    def step(t, carry):
        h, c = carry
        r = pl.multiple_of(t * Bp, Bp)
        g = gx_ref[pl.ds(r, Bp), :] + jnp.dot(
            h.astype(jnp.bfloat16), wh_ref[...],
            preferred_element_type=jnp.float32)                 # (Bp, 512)
        i = jax.nn.sigmoid(g[:, 0 * GL:1 * GL])
        f = jax.nn.sigmoid(g[:, 1 * GL:2 * GL])
        gg = jnp.tanh(g[:, 2 * GL:3 * GL])
        o = jax.nn.sigmoid(g[:, 3 * GL:4 * GL])
        c = f * c + i * gg
        h = o * jnp.tanh(c)
        out_ref[t] = h                                          # lane-dense store
        return h, c

    hT, cT = lax.fori_loop(0, Tc, step, (h_ref[...], c_ref[...]),
                           unroll=min(8, Tc))
    h_ref[...] = hT
    c_ref[...] = cT


def build_bilstm_params(wih_f, whh_f, bf, wih_b, whh_b, bb, D, H):
    """Pack BOTH directions into shared 128-lane blocks (no per-direction pad).

    Input rows  (K=128): [x_fwd (D) | x_bwd (D) | 0]
    Hidden rows (K=128): [h_fwd (H) | h_bwd (H) | 0]
    Columns (N=4*128), gate-major i,f,g,o; each gate = [fwd H | bwd H | 0].
    Weights in bf16 (MXU native); bias stays f32 (added to the f32 Gx)."""
    GL = LANE
    assert 2 * D <= GL and 2 * H <= GL
    wx = np.zeros((GL, 4, GL), np.float32)
    wx[0:D, :, 0:H] = np.asarray(wih_f).reshape(D, 4, H)
    wx[D:2 * D, :, H:2 * H] = np.asarray(wih_b).reshape(D, 4, H)
    wh = np.zeros((GL, 4, GL), np.float32)
    wh[0:H, :, 0:H] = np.asarray(whh_f).reshape(H, 4, H)
    wh[H:2 * H, :, H:2 * H] = np.asarray(whh_b).reshape(H, 4, H)
    bias = np.zeros((1, 4, GL), np.float32)
    bias[0, :, 0:H] = np.asarray(bf).reshape(4, H)
    bias[0, :, H:2 * H] = np.asarray(bb).reshape(4, H)
    return (jnp.asarray(wx.reshape(GL, 4 * GL), jnp.bfloat16),
            jnp.asarray(wh.reshape(GL, 4 * GL), jnp.bfloat16),
            jnp.asarray(bias.reshape(1, 4 * GL), jnp.float32))


def bilstm(x_btd, wx, wh, b, *, tc_max=128):
    """x_btd: (B, T, D) f32.  Returns packed (Tp, Bp, 128) f32 LSTM output:
    lanes [0:H]=h_fwd at slot t, lanes [H:2H]=h_bwd of position T-1-t."""
    B, T, D = x_btd.shape
    LP, NG = wx.shape
    Bp = ((B + 7) // 8) * 8                # fill the 8 sublanes anyway
    Tc = T if T <= tc_max else tc_max
    Tp = ((T + Tc - 1) // Tc) * Tc         # chunk-pad T (extra zero steps are
                                           # after all real positions in both
                                           # scan directions -> no effect)
    x_tbd = jnp.transpose(x_btd, (1, 0, 2))                    # (T, B, D)
    x_cat = jnp.concatenate([x_tbd, x_tbd[::-1]], axis=-1)     # (T, B, 2D)
    x_pack = jnp.pad(x_cat, ((0, Tp - T), (0, Bp - B), (0, LP - 2 * D)))
    x_pack = x_pack.reshape(Tp * Bp, LP).astype(jnp.bfloat16)  # lane/tile dense

    out = pl.pallas_call(
        bilstm_kernel,
        out_shape=jax.ShapeDtypeStruct((Tp, Bp, LP), jnp.float32),
        grid=(Tp // Tc,),
        in_specs=[pl.BlockSpec((Tc * Bp, LP), lambda t: (t, 0)),
                  pl.BlockSpec((LP, NG), lambda t: (0, 0)),
                  pl.BlockSpec((LP, NG), lambda t: (0, 0)),
                  pl.BlockSpec((1, NG), lambda t: (0, 0))],
        out_specs=pl.BlockSpec((Tc, Bp, LP), lambda t: (t, 0, 0)),
        scratch_shapes=[pltpu.VMEM((Bp, LP), jnp.float32),      # h carry
                        pltpu.VMEM((Bp, LP), jnp.float32),      # c carry
                        pltpu.VMEM((Tc * Bp, NG), jnp.float32)],  # Gx chunk
        compiler_params=pltpu.CompilerParams(
            dimension_semantics=("arbitrary",)),
    )(x_pack, wx, wh, b)
    return out


# ------------------------- SAGE head kernel -------------------------

def sage_head_kernel(idx_ref, lstm_ref, adj_ref, seg_ref,
                     w1_ref, b1_ref, w2_ref, b2_ref, w3_ref, b3_ref,
                     wl_ref, bl_ref, out_ref, feat_ref, *, H, n_pad):
    """Node-feature gather from the packed BiLSTM output + 3x SAGEConv('gcn')
    + ReLU, batched over all graphs via a block-diagonal adjacency, then
    dgl.sum_nodes (segment matmul), dropout(eval)=identity, ReLU and Linear.

    idx_ref (SMEM, int32, len 3*BN): per node [t_fwd, t_bwd, valid].
    lstm_ref: (Tp, Bp, 128) f32 packed BiLSTM output.
    dgl 'gcn' aggregator: h_neigh = (sum_in h + h_self) / (in_deg + 1);
    out = h_neigh @ W + b (no fc_self).  adj[dst, src] = in-edge multiplicity.
    """
    BN, FPW = feat_ref.shape
    lane = lax.broadcasted_iota(jnp.int32, (1, FPW), 1)
    fwd_m = (lane < H).astype(jnp.float32)
    bwd_m = jnp.logical_and(lane >= H, lane < 2 * H).astype(jnp.float32)

    # Gather: fwd hidden of position p lives at slot p (lanes [0:H]); bwd hidden
    # of position p lives at slot T-1-p (lanes [H:2H]).  BN is tiny -> unrolled.
    for k in range(BN):
        tf = idx_ref[3 * k + 0]
        tb = idx_ref[3 * k + 1]
        valid = idx_ref[3 * k + 2].astype(jnp.float32)
        bidx = k // n_pad                      # static batch (sublane) index
        rf = lstm_ref[tf]                      # (Bp, 128)
        rb = lstm_ref[tb]                      # (Bp, 128)
        row = rf[bidx:bidx + 1, :] * fwd_m + rb[bidx:bidx + 1, :] * bwd_m
        feat_ref[pl.ds(k, 1), :] = row * valid

    A = adj_ref[...]                                   # (BN, BN)
    h = feat_ref[...]                                  # (BN, Fp)
    deg = jnp.sum(A, axis=-1, keepdims=True)           # dgl in_degrees
    inv = 1.0 / (deg + 1.0)                            # exact divide (parity)

    def layer(h_in, w_ref, b_ref):
        neigh = jnp.dot(A, h_in, preferred_element_type=jnp.float32)
        h_neigh = (neigh + h_in) * inv
        return jax.nn.relu(
            jnp.dot(h_neigh, w_ref[...], preferred_element_type=jnp.float32)
            + b_ref[...])

    h = layer(h, w1_ref, b1_ref)
    h = layer(h, w2_ref, b2_ref)
    h = layer(h, w3_ref, b3_ref)
    # dgl.sum_nodes over the real nodes of each graph (padding rows weighted 0)
    pooled = jnp.dot(seg_ref[...], h, preferred_element_type=jnp.float32)
    out_ref[...] = (jnp.dot(jax.nn.relu(pooled), wl_ref[...],
                            preferred_element_type=jnp.float32) + bl_ref[...])


def sage_head(idx, lstm_out, adj_bd, seg, sage_params, wl, bl, H, n_pad):
    w1, b1, w2, b2, w3, b3 = sage_params
    B = seg.shape[0]
    C = wl.shape[1]
    BN = adj_bd.shape[0]
    kern = functools.partial(sage_head_kernel, H=H, n_pad=n_pad)
    full2 = lambda a: pl.BlockSpec(a.shape, lambda i, *_: (0, 0))
    full3 = lambda a: pl.BlockSpec(a.shape, lambda i, *_: (0, 0, 0))
    return pl.pallas_call(
        kern,
        out_shape=jax.ShapeDtypeStruct((B, C), jnp.float32),
        grid_spec=pltpu.PrefetchScalarGridSpec(
            num_scalar_prefetch=1,
            grid=(1,),
            in_specs=[full3(lstm_out), full2(adj_bd), full2(seg),
                      full2(w1), full2(b1), full2(w2), full2(b2),
                      full2(w3), full2(b3), full2(wl), full2(bl)],
            out_specs=pl.BlockSpec((B, C), lambda i, *_: (0, 0)),
            scratch_shapes=[pltpu.VMEM((BN, FP), jnp.float32)]),
    )(idx, lstm_out, adj_bd, seg, w1, b1, w2, b2, w3, b3, wl, bl)


def pad2(a, rows, cols):
    return jnp.pad(a, ((0, rows - a.shape[0]), (0, cols - a.shape[1])))


# ------------------------- Python glue (graph construction) -------------------------

def regulate(docids, max_length):
    new, lengths = [], []
    for doc in docids:
        temp = doc[:max_length]
        lengths.append(len(temp))
        new.append(temp)
    return new, max(lengths)


def build_graph(doc, dep, ngram, n_pad):
    # new_map: unique words in first-occurrence order (node ids)
    uniq, old_to_new, first_pos = [], {}, []
    for idx, w in enumerate(doc):
        if w not in old_to_new:
            old_to_new[w] = len(uniq)
            uniq.append(w)
            first_pos.append(idx)
    n = len(uniq)
    A = np.zeros((n_pad, n_pad), np.float32)
    # add_seq_edges: sliding n-gram window + per-position self edge (multigraph)
    for index, sw in enumerate(doc):
        src = old_to_new[sw]
        for i in range(max(0, index - ngram), min(index + ngram + 1, len(doc))):
            dst = old_to_new[doc[i]]
            A[dst, src] += 1.0
        A[src, src] += 1.0
    # dependency edges
    try:
        for depen in dep.split(' '):
            d = depen.split('-')
            si, di = int(d[0]), int(d[1])
            if si >= len(doc) - 2 or di >= len(doc) - 2:
                continue
            A[old_to_new[doc[di]], old_to_new[doc[si]]] += 1.0
    except Exception:
        pass
    # dgl.add_self_loop inside sage_feature adds one more self loop per node
    for v in range(n):
        A[v, v] += 1.0
    return A, n, first_pos


# ------------------------- Driver -------------------------

if __name__ == "__main__":
    class_num = 4
    hidden_size_node = 32
    lstmout_dim = 50
    n_gram = 2
    max_length = 1000
    vocab_size = 16
    sage_dim = 2 * lstmout_dim          # 100, matches SAGEConv(100 -> 100)

    key = jax.random.PRNGKey(0)
    ks = jax.random.split(key, 12)

    # deterministic synthetic docs (id 0 is padding, so draw from [1, vocab_size))
    d1 = [int(v) for v in jax.random.randint(ks[0], (8,), 1, vocab_size)]
    d2 = [int(v) for v in jax.random.randint(ks[1], (6,), 1, vocab_size)]
    docids = [d1, d2]
    deps = ["0-2 1-3 2-4", "0-1 1-3"]

    # deterministic synthetic parameters
    node_emb = jax.random.normal(ks[2], (vocab_size, hidden_size_node), jnp.float32) * 0.5
    k_lstm = 1.0 / np.sqrt(lstmout_dim)
    uni = lambda k, s: jax.random.uniform(k, s, jnp.float32, -k_lstm, k_lstm)
    wih_f = uni(ks[3], (hidden_size_node, 4 * lstmout_dim))
    whh_f = uni(ks[4], (lstmout_dim, 4 * lstmout_dim))
    bf = uni(ks[5], (1, 4 * lstmout_dim))          # b_ih + b_hh folded
    wih_b = uni(ks[6], (hidden_size_node, 4 * lstmout_dim))
    whh_b = uni(ks[7], (lstmout_dim, 4 * lstmout_dim))
    bb = uni(ks[8], (1, 4 * lstmout_dim))

    sk = jax.random.split(ks[9], 6)
    w1 = jax.random.normal(sk[0], (sage_dim, sage_dim), jnp.float32) * 0.1
    w2 = jax.random.normal(sk[1], (sage_dim, sage_dim), jnp.float32) * 0.1
    w3 = jax.random.normal(sk[2], (sage_dim, sage_dim), jnp.float32) * 0.1
    b1 = jax.random.normal(sk[3], (1, sage_dim), jnp.float32) * 0.01
    b2 = jax.random.normal(sk[4], (1, sage_dim), jnp.float32) * 0.01
    b3 = jax.random.normal(sk[5], (1, sage_dim), jnp.float32) * 0.01

    w_lin = jax.random.normal(ks[10], (sage_dim, class_num), jnp.float32) * 0.1
    b_lin = jax.random.normal(ks[11], (1, class_num), jnp.float32) * 0.01

    # ---------------- forward pass ----------------
    doc_ids, partmax = regulate(docids, max_length)
    B = len(doc_ids)
    T = partmax
    padded = np.zeros((B, T), np.int32)
    for i, d in enumerate(doc_ids):
        padded[i, :len(d)] = d
    mask = (padded != 0).astype(np.float32)

    # embedding lookup + padding mask (glue)
    embed = node_emb[jnp.asarray(padded)] * jnp.asarray(mask)[..., None]     # (B, T, D)

    # BiLSTM (Pallas, packed directions, hoisted input projection, bf16 weights)
    wx, wh, b_all = build_bilstm_params(wih_f, whh_f, bf, wih_b, whh_b, bb,
                                        hidden_size_node, lstmout_dim)
    lstm_packed = bilstm(embed, wx, wh, b_all)                 # (Tp, Bp, 128)

    # per-doc graph construction (glue) -> block-diagonal batched graph
    n_pad = 8
    BN = B * n_pad
    adj_bd = np.zeros((BN, BN), np.float32)
    seg = np.zeros((B, BN), np.float32)
    idx = np.zeros((3 * BN,), np.int32)        # per node: t_fwd, t_bwd, valid
    for b, (doc, dep) in enumerate(zip(doc_ids, deps)):
        A, n, first_pos = build_graph(doc, dep, n_gram, n_pad)
        assert n <= n_pad
        adj_bd[b * n_pad:(b + 1) * n_pad, b * n_pad:(b + 1) * n_pad] = A
        seg[b, b * n_pad:b * n_pad + n] = 1.0      # dgl.sum_nodes over real nodes
        for j in range(n):
            k = b * n_pad + j
            idx[3 * k + 0] = first_pos[j]           # fwd hidden slot
            idx[3 * k + 1] = T - 1 - first_pos[j]   # bwd hidden slot (reversed time)
            idx[3 * k + 2] = 1

    # lane-pad SAGE / head weights to Fp=128 (zero pads keep the math unchanged)
    w1p, w2p, w3p = [pad2(w, FP, FP) for w in (w1, w2, w3)]
    b1p, b2p, b3p = [pad2(bv, 1, FP) for bv in (b1, b2, b3)]
    wlp = pad2(w_lin, FP, class_num)

    # fused gather + 3x SAGEConv + sum_nodes + dropout(eval)/ReLU/Linear
    logits = sage_head(jnp.asarray(idx), lstm_packed, jnp.asarray(adj_bd),
                       jnp.asarray(seg), (w1p, b1p, w2p, b2p, w3p, b3p),
                       wlp, b_lin, lstmout_dim, n_pad)                    # (B, C)

    logits = jax.block_until_ready(logits)
    assert logits.shape == (B, class_num)
    assert np.all(np.isfinite(np.asarray(logits)))
    print("KERNEL_OK")
</pallas_src>

<mosaic_0001>
module attributes {stable_mosaic.version = 11 : i64} {
  func.func @bilstm_kernel(%arg0: i32, %arg1: memref<64x128xbf16, #tpu.memory_space<vmem>>, %arg2: memref<128x512xbf16, #tpu.memory_space<vmem>>, %arg3: memref<128x512xbf16, #tpu.memory_space<vmem>>, %arg4: memref<1x512xf32, #tpu.memory_space<vmem>>, %arg5: memref<8x8x128xf32, #tpu.memory_space<vmem>>, %arg6: memref<8x128xf32, #tpu.memory_space<vmem>>, %arg7: memref<8x128xf32, #tpu.memory_space<vmem>>, %arg8: memref<64x512xf32, #tpu.memory_space<vmem>>) attributes {dimension_semantics = [#tpu.dimension_semantics<arbitrary>], iteration_bounds = array<i64: 1>, scalar_prefetch = 0 : i64, scratch_operands = 3 : i64, tpu.core_type = #tpu.core_type<tc>, window_params = [{transform_indices = @transform_0, window_bounds = array<i64: 64, 128>}, {pipeline_mode = #tpu.pipeline_mode<synchronous>, transform_indices = @transform_1, window_bounds = array<i64: 128, 512>}, {pipeline_mode = #tpu.pipeline_mode<synchronous>, transform_indices = @transform_2, window_bounds = array<i64: 128, 512>}, {pipeline_mode = #tpu.pipeline_mode<synchronous>, transform_indices = @transform_3, window_bounds = array<i64: 1, 512>}, {transform_indices = @transform_4, window_bounds = array<i64: 8, 8, 128>}]} {
    %c0_i32 = arith.constant 0 : i32
    %0 = arith.cmpi eq, %arg0, %c0_i32 : i32
    %1 = arith.extui %0 : i1 to i32
    %c0_i32_0 = arith.constant 0 : i32
    %2 = arith.cmpi ne, %1, %c0_i32_0 : i32
    scf.if %2 {
      %cst_97 = arith.constant 0.000000e+00 : f32
      %310 = vector.broadcast %cst_97 : f32 to vector<8x128xf32>
      %c0_98 = arith.constant 0 : index
      %c0_99 = arith.constant 0 : index
      %311 = vector.load %arg6[%c0_98, %c0_99] : memref<8x128xf32, #tpu.memory_space<vmem>>, vector<8x128xf32>
      tpu.vector_store %arg6[%c0_98, %c0_99], %310 {strides = array<i32>} : memref<8x128xf32, #tpu.memory_space<vmem>>, vector<8x128xf32>,
      %cst_100 = arith.constant 0.000000e+00 : f32
      %312 = vector.broadcast %cst_100 : f32 to vector<8x128xf32>
      %c0_101 = arith.constant 0 : index
      %c0_102 = arith.constant 0 : index
      %313 = vector.load %arg7[%c0_101, %c0_102] : memref<8x128xf32, #tpu.memory_space<vmem>>, vector<8x128xf32>
      tpu.vector_store %arg7[%c0_101, %c0_102], %312 {strides = array<i32>} : memref<8x128xf32, #tpu.memory_space<vmem>>, vector<8x128xf32>,
    } else {
    }
    %c0 = arith.constant 0 : index
    %c0_1 = arith.constant 0 : index
    %3 = vector.load %arg1[%c0, %c0_1] : memref<64x128xbf16, #tpu.memory_space<vmem>>, vector<64x128xbf16>
    %c0_2 = arith.constant 0 : index
    %c0_3 = arith.constant 0 : index
    %4 = vector.load %arg2[%c0_2, %c0_3] : memref<128x512xbf16, #tpu.memory_space<vmem>>, vector<128x512xbf16>
    %cst = arith.constant dense<0.000000e+00> : vector<64x512xf32>
    %5 = tpu.matmul %3, %4, %cst {dimension_numbers = #tpu.dot_dimension_numbers<[1], [0], [0], [1], [0, 0, 1, 1], [], []>} : vector<64x128xbf16>, vector<128x512xbf16>, vector<64x512xf32> -> vector<64x512xf32>
    %c0_4 = arith.constant 0 : index
    %c0_5 = arith.constant 0 : index
    %6 = vector.load %arg4[%c0_4, %c0_5] : memref<1x512xf32, #tpu.memory_space<vmem>>, vector<1x512xf32>
    %7 = vector.broadcast %6 : vector<1x512xf32> to vector<64x512xf32>
    %8 = arith.addf %5, %7 : vector<64x512xf32>
    %c0_6 = arith.constant 0 : index
    %c0_7 = arith.constant 0 : index
    %9 = vector.load %arg8[%c0_6, %c0_7] : memref<64x512xf32, #tpu.memory_space<vmem>>, vector<64x512xf32>
    tpu.vector_store %arg8[%c0_6, %c0_7], %8 {strides = array<i32>} : memref<64x512xf32, #tpu.memory_space<vmem>>, vector<64x512xf32>,
    %c0_8 = arith.constant 0 : index
    %c0_9 = arith.constant 0 : index
    %10 = vector.load %arg6[%c0_8, %c0_9] : memref<8x128xf32, #tpu.memory_space<vmem>>, vector<8x128xf32>
    %c0_10 = arith.constant 0 : index
    %c0_11 = arith.constant 0 : index
    %11 = vector.load %arg7[%c0_10, %c0_11] : memref<8x128xf32, #tpu.memory_space<vmem>>, vector<8x128xf32>
    %c0_i32_12 = arith.constant 0 : i32
    %c8_i32 = arith.constant 8 : i32
    %12 = arith.muli %c0_i32_12, %c8_i32 : i32
    %13 = tpu.assume_multiple %12, 8 : i32
    %14 = arith.index_cast %13 : i32 to index
    %c0_13 = arith.constant 0 : index
    %15 = vector.load %arg8[%14, %c0_13] : memref<64x512xf32, #tpu.memory_space<vmem>>, vector<8x512xf32>
    %16 = arith.truncf %10 : vector<8x128xf32> to vector<8x128xbf16>
    %c0_14 = arith.constant 0 : index
    %c0_15 = arith.constant 0 : index
    %17 = vector.load %arg3[%c0_14, %c0_15] : memref<128x512xbf16, #tpu.memory_space<vmem>>, vector<128x512xbf16>
    %cst_16 = arith.constant dense<0.000000e+00> : vector<8x512xf32>
    %18 = tpu.matmul %16, %17, %cst_16 {dimension_numbers = #tpu.dot_dimension_numbers<[1], [0], [0], [1], [0, 0, 1, 1], [], []>} : vector<8x128xbf16>, vector<128x512xbf16>, vector<8x512xf32> -> vector<8x512xf32>
    %19 = arith.addf %15, %18 : vector<8x512xf32>
    %20 = vector.extract_strided_slice %19 {offsets = [0, 0], sizes = [8, 128], strides = [1, 1]} : vector<8x512xf32> to vector<8x128xf32>
    %21 = arith.negf %20 : vector<8x128xf32>
    %22 = math.exp %21 : vector<8x128xf32>
    %cst_17 = arith.constant 1.000000e+00 : f32
    %23 = vector.broadcast %cst_17 : f32 to vector<8x128xf32>
    %24 = arith.addf %23, %22 : vector<8x128xf32>
    %25 = arith.divf %23, %24 : vector<8x128xf32>
    %26 = vector.extract_strided_slice %19 {offsets = [0, 128], sizes = [8, 128], strides = [1, 1]} : vector<8x512xf32> to vector<8x128xf32>
    %27 = arith.negf %26 : vector<8x128xf32>
    %28 = math.exp %27 : vector<8x128xf32>
    %cst_18 = arith.constant 1.000000e+00 : f32
    %29 = vector.broadcast %cst_18 : f32 to vector<8x128xf32>
    %30 = arith.addf %29, %28 : vector<8x128xf32>
    %31 = arith.divf %29, %30 : vector<8x128xf32>
    %32 = vector.extract_strided_slice %19 {offsets = [0, 256], sizes = [8, 128], strides = [1, 1]} : vector<8x512xf32> to vector<8x128xf32>
    %33 = math.tanh %32 : vector<8x128xf32>
    %34 = vector.extract_strided_slice %19 {offsets = [0, 384], sizes = [8, 128], strides = [1, 1]} : vector<8x512xf32> to vector<8x128xf32>
    %35 = arith.negf %34 : vector<8x128xf32>
    %36 = math.exp %35 : vector<8x128xf32>
    %cst_19 = arith.constant 1.000000e+00 : f32
    %37 = vector.broadcast %cst_19 : f32 to vector<8x128xf32>
    %38 = arith.addf %37, %36 : vector<8x128xf32>
    %39 = arith.divf %37, %38 : vector<8x128xf32>
    %40 = arith.mulf %31, %11 : vector<8x128xf32>
    %41 = arith.mulf %25, %33 : vector<8x128xf32>
    %42 = arith.addf %40, %41 : vector<8x128xf32>
    %43 = math.tanh %42 : vector<8x128xf32>
    %44 = arith.mulf %39, %43 : vector<8x128xf32>
    %45 = arith.index_cast %c0_i32_12 : i32 to index
    %c0_20 = arith.constant 0 : index
    %c0_21 = arith.constant 0 : index
    %46 = vector.load %arg5[%45, %c0_20, %c0_21] : memref<8x8x128xf32, #tpu.memory_space<vmem>>, vector<1x8x128xf32>
    %47 = vector.shape_cast %46 : vector<1x8x128xf32> to vector<8x128xf32>
    %48 = vector.shape_cast %44 : vector<8x128xf32> to vector<1x8x128xf32>
    tpu.vector_store %arg5[%45, %c0_20, %c0_21], %48 {strides = array<i32>} : memref<8x8x128xf32, #tpu.memory_space<vmem>>, vector<1x8x128xf32>,
    %c1_i32 = arith.constant 1 : i32
    %c8_i32_22 = arith.constant 8 : i32
    %49 = arith.muli %c1_i32, %c8_i32_22 : i32
    %50 = tpu.assume_multiple %49, 8 : i32
    %51 = arith.index_cast %50 : i32 to index
    %c0_23 = arith.constant 0 : index
    %52 = vector.load %arg8[%51, %c0_23] : memref<64x512xf32, #tpu.memory_space<vmem>>, vector<8x512xf32>
    %53 = arith.truncf %44 : vector<8x128xf32> to vector<8x128xbf16>
    %c0_24 = arith.constant 0 : index
    %c0_25 = arith.constant 0 : index
    %54 = vector.load %arg3[%c0_24, %c0_25] : memref<128x512xbf16, #tpu.memory_space<vmem>>, vector<128x512xbf16>
    %cst_26 = arith.constant dense<0.000000e+00> : vector<8x512xf32>
    %55 = tpu.matmul %53, %54, %cst_26 {dimension_numbers = #tpu.dot_dimension_numbers<[1], [0], [0], [1], [0, 0, 1, 1], [], []>} : vector<8x128xbf16>, vector<128x512xbf16>, vector<8x512xf32> -> vector<8x512xf32>
    %56 = arith.addf %52, %55 : vector<8x512xf32>
    %57 = vector.extract_strided_slice %56 {offsets = [0, 0], sizes = [8, 128], strides = [1, 1]} : vector<8x512xf32> to vector<8x128xf32>
    %58 = arith.negf %57 : vector<8x128xf32>
    %59 = math.exp %58 : vector<8x128xf32>
    %cst_27 = arith.constant 1.000000e+00 : f32
    %60 = vector.broadcast %cst_27 : f32 to vector<8x128xf32>
    %61 = arith.addf %60, %59 : vector<8x128xf32>
    %62 = arith.divf %60, %61 : vector<8x128xf32>
    %63 = vector.extract_strided_slice %56 {offsets = [0, 128], sizes = [8, 128], strides = [1, 1]} : vector<8x512xf32> to vector<8x128xf32>
    %64 = arith.negf %63 : vector<8x128xf32>
    %65 = math.exp %64 : vector<8x128xf32>
    %cst_28 = arith.constant 1.000000e+00 : f32
    %66 = vector.broadcast %cst_28 : f32 to vector<8x128xf32>
    %67 = arith.addf %66, %65 : vector<8x128xf32>
    %68 = arith.divf %66, %67 : vector<8x128xf32>
    %69 = vector.extract_strided_slice %56 {offsets = [0, 256], sizes = [8, 128], strides = [1, 1]} : vector<8x512xf32> to vector<8x128xf32>
    %70 = math.tanh %69 : vector<8x128xf32>
    %71 = vector.extract_strided_slice %56 {offsets = [0, 384], sizes = [8, 128], strides = [1, 1]} : vector<8x512xf32> to vector<8x128xf32>
    %72 = arith.negf %71 : vector<8x128xf32>
    %73 = math.exp %72 : vector<8x128xf32>
    %cst_29 = arith.constant 1.000000e+00 : f32
    %74 = vector.broadcast %cst_29 : f32 to vector<8x128xf32>
    %75 = arith.addf %74, %73 : vector<8x128xf32>
    %76 = arith.divf %74, %75 : vector<8x128xf32>
    %77 = arith.mulf %68, %42 : vector<8x128xf32>
    %78 = arith.mulf %62, %70 : vector<8x128xf32>
    %79 = arith.addf %77, %78 : vector<8x128xf32>
    %80 = math.tanh %79 : vector<8x128xf32>
    %81 = arith.mulf %76, %80 : vector<8x128xf32>
    %82 = arith.index_cast %c1_i32 : i32 to index
    %c0_30 = arith.constant 0 : index
    %c0_31 = arith.constant 0 : index
    %83 = vector.load %arg5[%82, %c0_30, %c0_31] : memref<8x8x128xf32, #tpu.memory_space<vmem>>, vector<1x8x128xf32>
    %84 = vector.shape_cast %83 : vector<1x8x128xf32> to vector<8x128xf32>
    %85 = vector.shape_cast %81 : vector<8x128xf32> to vector<1x8x128xf32>
    tpu.vector_store %arg5[%82, %c0_30, %c0_31], %85 {strides = array<i32>} : memref<8x8x128xf32, #tpu.memory_space<vmem>>, vector<1x8x128xf32>,
    %c2_i32 = arith.constant 2 : i32
    %c8_i32_32 = arith.constant 8 : i32
    %86 = arith.muli %c2_i32, %c8_i32_32 : i32
    %87 = tpu.assume_multiple %86, 8 : i32
    %88 = arith.index_cast %87 : i32 to index
    %c0_33 = arith.constant 0 : index
    %89 = vector.load %arg8[%88, %c0_33] : memref<64x512xf32, #tpu.memory_space<vmem>>, vector<8x512xf32>
    %90 = arith.truncf %81 : vector<8x128xf32> to vector<8x128xbf16>
    %c0_34 = arith.constant 0 : index
    %c0_35 = arith.constant 0 : index
    %91 = vector.load %arg3[%c0_34, %c0_35] : memref<128x512xbf16, #tpu.memory_space<vmem>>, vector<128x512xbf16>
    %cst_36 = arith.constant dense<0.000000e+00> : vector<8x512xf32>
    %92 = tpu.matmul %90, %91, %cst_36 {dimension_numbers = #tpu.dot_dimension_numbers<[1], [0], [0], [1], [0, 0, 1, 1], [], []>} : vector<8x128xbf16>, vector<128x512xbf16>, vector<8x512xf32> -> vector<8x512xf32>
    %93 = arith.addf %89, %92 : vector<8x512xf32>
    %94 = vector.extract_strided_slice %93 {offsets = [0, 0], sizes = [8, 128], strides = [1, 1]} : vector<8x512xf32> to vector<8x128xf32>
    %95 = arith.negf %94 : vector<8x128xf32>
    %96 = math.exp %95 : vector<8x128xf32>
    %cst_37 = arith.constant 1.000000e+00 : f32
    %97 = vector.broadcast %cst_37 : f32 to vector<8x128xf32>
    %98 = arith.addf %97, %96 : vector<8x128xf32>
    %99 = arith.divf %97, %98 : vector<8x128xf32>
    %100 = vector.extract_strided_slice %93 {offsets = [0, 128], sizes = [8, 128], strides = [1, 1]} : vector<8x512xf32> to vector<8x128xf32>
    %101 = arith.negf %100 : vector<8x128xf32>
    %102 = math.exp %101 : vector<8x128xf32>
    %cst_38 = arith.constant 1.000000e+00 : f32
    %103 = vector.broadcast %cst_38 : f32 to vector<8x128xf32>
    %104 = arith.addf %103, %102 : vector<8x128xf32>
    %105 = arith.divf %103, %104 : vector<8x128xf32>
    %106 = vector.extract_strided_slice %93 {offsets = [0, 256], sizes = [8, 128], strides = [1, 1]} : vector<8x512xf32> to vector<8x128xf32>
    %107 = math.tanh %106 : vector<8x128xf32>
    %108 = vector.extract_strided_slice %93 {offsets = [0, 384], sizes = [8, 128], strides = [1, 1]} : vector<8x512xf32> to vector<8x128xf32>
    %109 = arith.negf %108 : vector<8x128xf32>
    %110 = math.exp %109 : vector<8x128xf32>
    %cst_39 = arith.constant 1.000000e+00 : f32
    %111 = vector.broadcast %cst_39 : f32 to vector<8x128xf32>
    %112 = arith.addf %111, %110 : vector<8x128xf32>
    %113 = arith.divf %111, %112 : vector<8x128xf32>
    %114 = arith.mulf %105, %79 : vector<8x128xf32>
    %115 = arith.mulf %99, %107 : vector<8x128xf32>
    %116 = arith.addf %114, %115 : vector<8x128xf32>
    %117 = math.tanh %116 : vector<8x128xf32>
    %118 = arith.mulf %113, %117 : vector<8x128xf32>
    %119 = arith.index_cast %c2_i32 : i32 to index
    %c0_40 = arith.constant 0 : index
    %c0_41 = arith.constant 0 : index
    %120 = vector.load %arg5[%119, %c0_40, %c0_41] : memref<8x8x128xf32, #tpu.memory_space<vmem>>, vector<1x8x128xf32>
    %121 = vector.shape_cast %120 : vector<1x8x128xf32> to vector<8x128xf32>
    %122 = vector.shape_cast %118 : vector<8x128xf32> to vector<1x8x128xf32>
    tpu.vector_store %arg5[%119, %c0_40, %c0_41], %122 {strides = array<i32>} : memref<8x8x128xf32, #tpu.memory_space<vmem>>, vector<1x8x128xf32>,
    %c3_i32 = arith.constant 3 : i32
    %c8_i32_42 = arith.constant 8 : i32
    %123 = arith.muli %c3_i32, %c8_i32_42 : i32
    %124 = tpu.assume_multiple %123, 8 : i32
    %125 = arith.index_cast %124 : i32 to index
    %c0_43 = arith.constant 0 : index
    %126 = vector.load %arg8[%125, %c0_43] : memref<64x512xf32, #tpu.memory_space<vmem>>, vector<8x512xf32>
    %127 = arith.truncf %118 : vector<8x128xf32> to vector<8x128xbf16>
    %c0_44 = arith.constant 0 : index
    %c0_45 = arith.constant 0 : index
    %128 = vector.load %arg3[%c0_44, %c0_45] : memref<128x512xbf16, #tpu.memory_space<vmem>>, vector<128x512xbf16>
    %cst_46 = arith.constant dense<0.000000e+00> : vector<8x512xf32>
    %129 = tpu.matmul %127, %128, %cst_46 {dimension_numbers = #tpu.dot_dimension_numbers<[1], [0], [0], [1], [0, 0, 1, 1], [], []>} : vector<8x128xbf16>, vector<128x512xbf16>, vector<8x512xf32> -> vector<8x512xf32>
    %130 = arith.addf %126, %129 : vector<8x512xf32>
    %131 = vector.extract_strided_slice %130 {offsets = [0, 0], sizes = [8, 128], strides = [1, 1]} : vector<8x512xf32> to vector<8x128xf32>
    %132 = arith.negf %131 : vector<8x128xf32>
    %133 = math.exp %132 : vector<8x128xf32>
    %cst_47 = arith.constant 1.000000e+00 : f32
    %134 = vector.broadcast %cst_47 : f32 to vector<8x128xf32>
    %135 = arith.addf %134, %133 : vector<8x128xf32>
    %136 = arith.divf %134, %135 : vector<8x128xf32>
    %137 = vector.extract_strided_slice %130 {offsets = [0, 128], sizes = [8, 128], strides = [1, 1]} : vector<8x512xf32> to vector<8x128xf32>
    %138 = arith.negf %137 : vector<8x128xf32>
    %139 = math.exp %138 : vector<8x128xf32>
    %cst_48 = arith.constant 1.000000e+00 : f32
    %140 = vector.broadcast %cst_48 : f32 to vector<8x128xf32>
    %141 = arith.addf %140, %139 : vector<8x128xf32>
    %142 = arith.divf %140, %141 : vector<8x128xf32>
    %143 = vector.extract_strided_slice %130 {offsets = [0, 256], sizes = [8, 128], strides = [1, 1]} : vector<8x512xf32> to vector<8x128xf32>
    %144 = math.tanh %143 : vector<8x128xf32>
    %145 = vector.extract_strided_slice %130 {offsets = [0, 384], sizes = [8, 128], strides = [1, 1]} : vector<8x512xf32> to vector<8x128xf32>
    %146 = arith.negf %145 : vector<8x128xf32>
    %147 = math.exp %146 : vector<8x128xf32>
    %cst_49 = arith.constant 1.000000e+00 : f32
    %148 = vector.broadcast %cst_49 : f32 to vector<8x128xf32>
    %149 = arith.addf %148, %147 : vector<8x128xf32>
    %150 = arith.divf %148, %149 : vector<8x128xf32>
    %151 = arith.mulf %142, %116 : vector<8x128xf32>
    %152 = arith.mulf %136, %144 : vector<8x128xf32>
    %153 = arith.addf %151, %152 : vector<8x128xf32>
    %154 = math.tanh %153 : vector<8x128xf32>
    %155 = arith.mulf %150, %154 : vector<8x128xf32>
    %156 = arith.index_cast %c3_i32 : i32 to index
    %c0_50 = arith.constant 0 : index
    %c0_51 = arith.constant 0 : index
    %157 = vector.load %arg5[%156, %c0_50, %c0_51] : memref<8x8x128xf32, #tpu.memory_space<vmem>>, vector<1x8x128xf32>
    %158 = vector.shape_cast %157 : vector<1x8x128xf32> to vector<8x128xf32>
    %159 = vector.shape_cast %155 : vector<8x128xf32> to vector<1x8x128xf32>
    tpu.vector_store %arg5[%156, %c0_50, %c0_51], %159 {strides = array<i32>} : memref<8x8x128xf32, #tpu.memory_space<vmem>>, vector<1x8x128xf32>,
    %c4_i32 = arith.constant 4 : i32
    %c8_i32_52 = arith.constant 8 : i32
    %160 = arith.muli %c4_i32, %c8_i32_52 : i32
    %161 = tpu.assume_multiple %160, 8 : i32
    %162 = arith.index_cast %161 : i32 to index
    %c0_53 = arith.constant 0 : index
    %163 = vector.load %arg8[%162, %c0_53] : memref<64x512xf32, #tpu.memory_space<vmem>>, vector<8x512xf32>
    %164 = arith.truncf %155 : vector<8x128xf32> to vector<8x128xbf16>
    %c0_54 = arith.constant 0 : index
    %c0_55 = arith.constant 0 : index
    %165 = vector.load %arg3[%c0_54, %c0_55] : memref<128x512xbf16, #tpu.memory_space<vmem>>, vector<128x512xbf16>
    %cst_56 = arith.constant dense<0.000000e+00> : vector<8x512xf32>
    %166 = tpu.matmul %164, %165, %cst_56 {dimension_numbers = #tpu.dot_dimension_numbers<[1], [0], [0], [1], [0, 0, 1, 1], [], []>} : vector<8x128xbf16>, vector<128x512xbf16>, vector<8x512xf32> -> vector<8x512xf32>
    %167 = arith.addf %163, %166 : vector<8x512xf32>
    %168 = vector.extract_strided_slice %167 {offsets = [0, 0], sizes = [8, 128], strides = [1, 1]} : vector<8x512xf32> to vector<8x128xf32>
    %169 = arith.negf %168 : vector<8x128xf32>
    %170 = math.exp %169 : vector<8x128xf32>
    %cst_57 = arith.constant 1.000000e+00 : f32
    %171 = vector.broadcast %cst_57 : f32 to vector<8x128xf32>
    %172 = arith.addf %171, %170 : vector<8x128xf32>
    %173 = arith.divf %171, %172 : vector<8x128xf32>
    %174 = vector.extract_strided_slice %167 {offsets = [0, 128], sizes = [8, 128], strides = [1, 1]} : vector<8x512xf32> to vector<8x128xf32>
    %175 = arith.negf %174 : vector<8x128xf32>
    %176 = math.exp %175 : vector<8x128xf32>
    %cst_58 = arith.constant 1.000000e+00 : f32
    %177 = vector.broadcast %cst_58 : f32 to vector<8x128xf32>
    %178 = arith.addf %177, %176 : vector<8x128xf32>
    %179 = arith.divf %177, %178 : vector<8x128xf32>
    %180 = vector.extract_strided_slice %167 {offsets = [0, 256], sizes = [8, 128], strides = [1, 1]} : vector<8x512xf32> to vector<8x128xf32>
    %181 = math.tanh %180 : vector<8x128xf32>
    %182 = vector.extract_strided_slice %167 {offsets = [0, 384], sizes = [8, 128], strides = [1, 1]} : vector<8x512xf32> to vector<8x128xf32>
    %183 = arith.negf %182 : vector<8x128xf32>
    %184 = math.exp %183 : vector<8x128xf32>
    %cst_59 = arith.constant 1.000000e+00 : f32
    %185 = vector.broadcast %cst_59 : f32 to vector<8x128xf32>
    %186 = arith.addf %185, %184 : vector<8x128xf32>
    %187 = arith.divf %185, %186 : vector<8x128xf32>
    %188 = arith.mulf %179, %153 : vector<8x128xf32>
    %189 = arith.mulf %173, %181 : vector<8x128xf32>
    %190 = arith.addf %188, %189 : vector<8x128xf32>
    %191 = math.tanh %190 : vector<8x128xf32>
    %192 = arith.mulf %187, %191 : vector<8x128xf32>
    %193 = arith.index_cast %c4_i32 : i32 to index
    %c0_60 = arith.constant 0 : index
    %c0_61 = arith.constant 0 : index
    %194 = vector.load %arg5[%193, %c0_60, %c0_61] : memref<8x8x128xf32, #tpu.memory_space<vmem>>, vector<1x8x128xf32>
    %195 = vector.shape_cast %194 : vector<1x8x128xf32> to vector<8x128xf32>
    %196 = vector.shape_cast %192 : vector<8x128xf32> to vector<1x8x128xf32>
    tpu.vector_store %arg5[%193, %c0_60, %c0_61], %196 {strides = array<i32>} : memref<8x8x128xf32, #tpu.memory_space<vmem>>, vector<1x8x128xf32>,
    %c5_i32 = arith.constant 5 : i32
    %c8_i32_62 = arith.constant 8 : i32
    %197 = arith.muli %c5_i32, %c8_i32_62 : i32
    %198 = tpu.assume_multiple %197, 8 : i32
    %199 = arith.index_cast %198 : i32 to index
    %c0_63 = arith.constant 0 : index
    %200 = vector.load %arg8[%199, %c0_63] : memref<64x512xf32, #tpu.memory_space<vmem>>, vector<8x512xf32>
    %201 = arith.truncf %192 : vector<8x128xf32> to vector<8x128xbf16>
    %c0_64 = arith.constant 0 : index
    %c0_65 = arith.constant 0 : index
    %202 = vector.load %arg3[%c0_64, %c0_65] : memref<128x512xbf16, #tpu.memory_space<vmem>>, vector<128x512xbf16>
    %cst_66 = arith.constant dense<0.000000e+00> : vector<8x512xf32>
    %203 = tpu.matmul %201, %202, %cst_66 {dimension_numbers = #tpu.dot_dimension_numbers<[1], [0], [0], [1], [0, 0, 1, 1], [], []>} : vector<8x128xbf16>, vector<128x512xbf16>, vector<8x512xf32> -> vector<8x512xf32>
    %204 = arith.addf %200, %203 : vector<8x512xf32>
    %205 = vector.extract_strided_slice %204 {offsets = [0, 0], sizes = [8, 128], strides = [1, 1]} : vector<8x512xf32> to vector<8x128xf32>
    %206 = arith.negf %205 : vector<8x128xf32>
    %207 = math.exp %206 : vector<8x128xf32>
    %cst_67 = arith.constant 1.000000e+00 : f32
    %208 = vector.broadcast %cst_67 : f32 to vector<8x128xf32>
    %209 = arith.addf %208, %207 : vector<8x128xf32>
    %210 = arith.divf %208, %209 : vector<8x128xf32>
    %211 = vector.extract_strided_slice %204 {offsets = [0, 128], sizes = [8, 128], strides = [1, 1]} : vector<8x512xf32> to vector<8x128xf32>
    %212 = arith.negf %211 : vector<8x128xf32>
    %213 = math.exp %212 : vector<8x128xf32>
    %cst_68 = arith.constant 1.000000e+00 : f32
    %214 = vector.broadcast %cst_68 : f32 to vector<8x128xf32>
    %215 = arith.addf %214, %213 : vector<8x128xf32>
    %216 = arith.divf %214, %215 : vector<8x128xf32>
    %217 = vector.extract_strided_slice %204 {offsets = [0, 256], sizes = [8, 128], strides = [1, 1]} : vector<8x512xf32> to vector<8x128xf32>
    %218 = math.tanh %217 : vector<8x128xf32>
    %219 = vector.extract_strided_slice %204 {offsets = [0, 384], sizes = [8, 128], strides = [1, 1]} : vector<8x512xf32> to vector<8x128xf32>
    %220 = arith.negf %219 : vector<8x128xf32>
    %221 = math.exp %220 : vector<8x128xf32>
    %cst_69 = arith.constant 1.000000e+00 : f32
    %222 = vector.broadcast %cst_69 : f32 to vector<8x128xf32>
    %223 = arith.addf %222, %221 : vector<8x128xf32>
    %224 = arith.divf %222, %223 : vector<8x128xf32>
    %225 = arith.mulf %216, %190 : vector<8x128xf32>
    %226 = arith.mulf %210, %218 : vector<8x128xf32>
    %227 = arith.addf %225, %226 : vector<8x128xf32>
    %228 = math.tanh %227 : vector<8x128xf32>
    %229 = arith.mulf %224, %228 : vector<8x128xf32>
    %230 = arith.index_cast %c5_i32 : i32 to index
    %c0_70 = arith.constant 0 : index
    %c0_71 = arith.constant 0 : index
    %231 = vector.load %arg5[%230, %c0_70, %c0_71] : memref<8x8x128xf32, #tpu.memory_space<vmem>>, vector<1x8x128xf32>
    %232 = vector.shape_cast %231 : vector<1x8x128xf32> to vector<8x128xf32>
    %233 = vector.shape_cast %229 : vector<8x128xf32> to vector<1x8x128xf32>
    tpu.vector_store %arg5[%230, %c0_70, %c0_71], %233 {strides = array<i32>} : memref<8x8x128xf32, #tpu.memory_space<vmem>>, vector<1x8x128xf32>,
    %c6_i32 = arith.constant 6 : i32
    %c8_i32_72 = arith.constant 8 : i32
    %234 = arith.muli %c6_i32, %c8_i32_72 : i32
    %235 = tpu.assume_multiple %234, 8 : i32
    %236 = arith.index_cast %235 : i32 to index
    %c0_73 = arith.constant 0 : index
    %237 = vector.load %arg8[%236, %c0_73] : memref<64x512xf32, #tpu.memory_space<vmem>>, vector<8x512xf32>
    %238 = arith.truncf %229 : vector<8x128xf32> to vector<8x128xbf16>
    %c0_74 = arith.constant 0 : index
    %c0_75 = arith.constant 0 : index
    %239 = vector.load %arg3[%c0_74, %c0_75] : memref<128x512xbf16, #tpu.memory_space<vmem>>, vector<128x512xbf16>
    %cst_76 = arith.constant dense<0.000000e+00> : vector<8x512xf32>
    %240 = tpu.matmul %238, %239, %cst_76 {dimension_numbers = #tpu.dot_dimension_numbers<[1], [0], [0], [1], [0, 0, 1, 1], [], []>} : vector<8x128xbf16>, vector<128x512xbf16>, vector<8x512xf32> -> vector<8x512xf32>
    %241 = arith.addf %237, %240 : vector<8x512xf32>
    %242 = vector.extract_strided_slice %241 {offsets = [0, 0], sizes = [8, 128], strides = [1, 1]} : vector<8x512xf32> to vector<8x128xf32>
    %243 = arith.negf %242 : vector<8x128xf32>
    %244 = math.exp %243 : vector<8x128xf32>
    %cst_77 = arith.constant 1.000000e+00 : f32
    %245 = vector.broadcast %cst_77 : f32 to vector<8x128xf32>
    %246 = arith.addf %245, %244 : vector<8x128xf32>
    %247 = arith.divf %245, %246 : vector<8x128xf32>
    %248 = vector.extract_strided_slice %241 {offsets = [0, 128], sizes = [8, 128], strides = [1, 1]} : vector<8x512xf32> to vector<8x128xf32>
    %249 = arith.negf %248 : vector<8x128xf32>
    %250 = math.exp %249 : vector<8x128xf32>
    %cst_78 = arith.constant 1.000000e+00 : f32
    %251 = vector.broadcast %cst_78 : f32 to vector<8x128xf32>
    %252 = arith.addf %251, %250 : vector<8x128xf32>
    %253 = arith.divf %251, %252 : vector<8x128xf32>
    %254 = vector.extract_strided_slice %241 {offsets = [0, 256], sizes = [8, 128], strides = [1, 1]} : vector<8x512xf32> to vector<8x128xf32>
    %255 = math.tanh %254 : vector<8x128xf32>
    %256 = vector.extract_strided_slice %241 {offsets = [0, 384], sizes = [8, 128], strides = [1, 1]} : vector<8x512xf32> to vector<8x128xf32>
    %257 = arith.negf %256 : vector<8x128xf32>
    %258 = math.exp %257 : vector<8x128xf32>
    %cst_79 = arith.constant 1.000000e+00 : f32
    %259 = vector.broadcast %cst_79 : f32 to vector<8x128xf32>
    %260 = arith.addf %259, %258 : vector<8x128xf32>
    %261 = arith.divf %259, %260 : vector<8x128xf32>
    %262 = arith.mulf %253, %227 : vector<8x128xf32>
    %263 = arith.mulf %247, %255 : vector<8x128xf32>
    %264 = arith.addf %262, %263 : vector<8x128xf32>
    %265 = math.tanh %264 : vector<8x128xf32>
    %266 = arith.mulf %261, %265 : vector<8x128xf32>
    %267 = arith.index_cast %c6_i32 : i32 to index
    %c0_80 = arith.constant 0 : index
    %c0_81 = arith.constant 0 : index
    %268 = vector.load %arg5[%267, %c0_80, %c0_81] : memref<8x8x128xf32, #tpu.memory_space<vmem>>, vector<1x8x128xf32>
    %269 = vector.shape_cast %268 : vector<1x8x128xf32> to vector<8x128xf32>
    %270 = vector.shape_cast %266 : vector<8x128xf32> to vector<1x8x128xf32>
    tpu.vector_store %arg5[%267, %c0_80, %c0_81], %270 {strides = array<i32>} : memref<8x8x128xf32, #tpu.memory_space<vmem>>, vector<1x8x128xf32>,
    %c7_i32 = arith.constant 7 : i32
    %c8_i32_82 = arith.constant 8 : i32
    %271 = arith.muli %c7_i32, %c8_i32_82 : i32
    %272 = tpu.assume_multiple %271, 8 : i32
    %273 = arith.index_cast %272 : i32 to index
    %c0_83 = arith.constant 0 : index
    %274 = vector.load %arg8[%273, %c0_83] : memref<64x512xf32, #tpu.memory_space<vmem>>, vector<8x512xf32>
    %275 = arith.truncf %266 : vector<8x128xf32> to vector<8x128xbf16>
    %c0_84 = arith.constant 0 : index
    %c0_85 = arith.constant 0 : index
    %276 = vector.load %arg3[%c0_84, %c0_85] : memref<128x512xbf16, #tpu.memory_space<vmem>>, vector<128x512xbf16>
    %cst_86 = arith.constant dense<0.000000e+00> : vector<8x512xf32>
    %277 = tpu.matmul %275, %276, %cst_86 {dimension_numbers = #tpu.dot_dimension_numbers<[1], [0], [0], [1], [0, 0, 1, 1], [], []>} : vector<8x128xbf16>, vector<128x512xbf16>, vector<8x512xf32> -> vector<8x512xf32>
    %278 = arith.addf %274, %277 : vector<8x512xf32>
    %279 = vector.extract_strided_slice %278 {offsets = [0, 0], sizes = [8, 128], strides = [1, 1]} : vector<8x512xf32> to vector<8x128xf32>
    %280 = arith.negf %279 : vector<8x128xf32>
    %281 = math.exp %280 : vector<8x128xf32>
    %cst_87 = arith.constant 1.000000e+00 : f32
    %282 = vector.broadcast %cst_87 : f32 to vector<8x128xf32>
    %283 = arith.addf %282, %281 : vector<8x128xf32>
    %284 = arith.divf %282, %283 : vector<8x128xf32>
    %285 = vector.extract_strided_slice %278 {offsets = [0, 128], sizes = [8, 128], strides = [1, 1]} : vector<8x512xf32> to vector<8x128xf32>
    %286 = arith.negf %285 : vector<8x128xf32>
    %287 = math.exp %286 : vector<8x128xf32>
    %cst_88 = arith.constant 1.000000e+00 : f32
    %288 = vector.broadcast %cst_88 : f32 to vector<8x128xf32>
    %289 = arith.addf %288, %287 : vector<8x128xf32>
    %290 = arith.divf %288, %289 : vector<8x128xf32>
    %291 = vector.extract_strided_slice %278 {offsets = [0, 256], sizes = [8, 128], strides = [1, 1]} : vector<8x512xf32> to vector<8x128xf32>
    %292 = math.tanh %291 : vector<8x128xf32>
    %293 = vector.extract_strided_slice %278 {offsets = [0, 384], sizes = [8, 128], strides = [1, 1]} : vector<8x512xf32> to vector<8x128xf32>
    %294 = arith.negf %293 : vector<8x128xf32>
    %295 = math.exp %294 : vector<8x128xf32>
    %cst_89 = arith.constant 1.000000e+00 : f32
    %296 = vector.broadcast %cst_89 : f32 to vector<8x128xf32>
    %297 = arith.addf %296, %295 : vector<8x128xf32>
    %298 = arith.divf %296, %297 : vector<8x128xf32>
    %299 = arith.mulf %290, %264 : vector<8x128xf32>
    %300 = arith.mulf %284, %292 : vector<8x128xf32>
    %301 = arith.addf %299, %300 : vector<8x128xf32>
    %302 = math.tanh %301 : vector<8x128xf32>
    %303 = arith.mulf %298, %302 : vector<8x128xf32>
    %304 = arith.index_cast %c7_i32 : i32 to index
    %c0_90 = arith.constant 0 : index
    %c0_91 = arith.constant 0 : index
    %305 = vector.load %arg5[%304, %c0_90, %c0_91] : memref<8x8x128xf32, #tpu.memory_space<vmem>>, vector<1x8x128xf32>
    %306 = vector.shape_cast %305 : vector<1x8x128xf32> to vector<8x128xf32>
    %307 = vector.shape_cast %303 : vector<8x128xf32> to vector<1x8x128xf32>
    tpu.vector_store %arg5[%304, %c0_90, %c0_91], %307 {strides = array<i32>} : memref<8x8x128xf32, #tpu.memory_space<vmem>>, vector<1x8x128xf32>,
    %c8_i32_92 = arith.constant 8 : i32
    %c0_93 = arith.constant 0 : index
    %c0_94 = arith.constant 0 : index
    %308 = vector.load %arg6[%c0_93, %c0_94] : memref<8x128xf32, #tpu.memory_space<vmem>>, vector<8x128xf32>
    tpu.vector_store %arg6[%c0_93, %c0_94], %303 {strides = array<i32>} : memref<8x128xf32, #tpu.memory_space<vmem>>, vector<8x128xf32>,
    %c0_95 = arith.constant 0 : index
    %c0_96 = arith.constant 0 : index
    %309 = vector.load %arg7[%c0_95, %c0_96] : memref<8x128xf32, #tpu.memory_space<vmem>>, vector<8x128xf32>
    tpu.vector_store %arg7[%c0_95, %c0_96], %301 {strides = array<i32>} : memref<8x128xf32, #tpu.memory_space<vmem>>, vector<8x128xf32>,
    return
  }
  func.func @transform_0(%arg0: i32) -> (i32, i32) {
    %c0_i32 = arith.constant 0 : i32
    %c0_i32_0 = arith.constant 0 : i32
    return %arg0, %c0_i32 : i32, i32
  }
  func.func @transform_1(%arg0: i32) -> (i32, i32) {
    %c0_i32 = arith.constant 0 : i32
    %c0_i32_0 = arith.constant 0 : i32
    %c0_i32_1 = arith.constant 0 : i32
    return %c0_i32, %c0_i32_0 : i32, i32
  }
  func.func @transform_2(%arg0: i32) -> (i32, i32) {
    %c0_i32 = arith.constant 0 : i32
    %c0_i32_0 = arith.constant 0 : i32
    %c0_i32_1 = arith.constant 0 : i32
    return %c0_i32, %c0_i32_0 : i32, i32
  }
  func.func @transform_3(%arg0: i32) -> (i32, i32) {
    %c0_i32 = arith.constant 0 : i32
    %c0_i32_0 = arith.constant 0 : i32
    %c0_i32_1 = arith.constant 0 : i32
    return %c0_i32, %c0_i32_0 : i32, i32
  }
  func.func @transform_4(%arg0: i32) -> (i32, i32, i32) {
    %c0_i32 = arith.constant 0 : i32
    %c0_i32_0 = arith.constant 0 : i32
    %c0_i32_1 = arith.constant 0 : i32
    return %arg0, %c0_i32, %c0_i32_0 : i32, i32, i32
  }
}

</mosaic_0001>

<bundles_post_ra>
// kernel: tpu_custom_call.1
= control target key start
LH: loop header
LB: loop body
LE: loop exit
PB: predicated region body
PF: predicated region fallthrough
CT: control target
= control target key end

     0   :  { %9 = vsyncpa [#allocation6], 0  ;;  %s4348_s0 = inlined_call_operand.hbm [shape: bf16[64,128], index: 0, kind: input, shape index: {}]   ;;  %s4349_s1 = inlined_call_operand.hbm [shape: bf16[128,512], index: 1, kind: input, shape index: {}]   ;;  %s4350_s2 = inlined_call_operand.hbm [shape: bf16[128,512], index: 2, kind: input, shape index: {}]   ;;  %s4351_s3 = inlined_call_operand.vmem [shape: f32[1,512], index: 3, kind: input, shape index: {}]   ;;  %s4352_s4 = inlined_call_operand.hbm [shape: f32[8,8,128], index: 4, kind: output, shape index: {}]  }
   0x1   :  { %10 = vsyncpa [#allocation9], 0 }
   0x2   :  { %11 = vsyncpa [#allocation7], 0  ;;  %s3712_s15 = smov [#allocation8]   ;;  %s3618_s19 = scalar_lea.hbm %s4349_s1, 4096 }
   0x3   :  { %s29_s16 = sshll.u32 %s3712_s15, 4  ;;  %p3619_p0 = scmp.ne.s32.totalorder %s4349_s1, %s3618_s19  ;;  %s30_s16 = int_to_ptr.vmem [resolvable:$true] %s29_s16 }
   0x4   :  { %p3622_p1 = scmp.lt.u32.totalorder %s3618_s19, %s4349_s1 }
   0x6   :  { %p3624_p2 = pnand %p3622_p1, %p3619_p0 }
   0x8   :  { %3627 = shalt.err (!%p3624_p2)
}
   0x9   :  { %s3628_s24 = scalar_lea.vmem %s30_s16, 4096  ;;  %p3633_p4 = scmp.lt.s32.totalorder %s30_s16, %s30_s16 }
   0xa   :  { %p3629_p3 = scmp.ne.s32.totalorder %s30_s16, %s3628_s24  ;;  %p3634_p5 = scmp.lt.s32.totalorder %s3628_s24, %s3628_s24 }
   0xc   :  { %p3635_p6 = por %p3634_p5, %p3633_p4 }
   0xe   :  { %p3636_p7 = pnand %p3635_p6, %p3629_p3 }
  0x10   :  { %3639 = shalt.err (!%p3636_p7)
}
  0x11   :  { %s3713_s25 = smov 256   ;;  %s3714_s26 = smov 16  }
  0x12   :  { %35 = dma.hbm_to_vmem [thread:$0]  %s4349_s1, 4096, %s30_s16, [#allocation9], %s3713_s25, %s3713_s25, %s3714_s26  }
  0x13   :  { %s3715_s29 = smov [#allocation5]   ;;  %s3640_s7 = scalar_lea.hbm %s4348_s0, 512 }
  0x14   :  { %s17_s30 = sshll.u32 %s3715_s29, 4  ;;  %p3641_p8 = scmp.ne.s32.totalorder %s4348_s0, %s3640_s7  ;;  %s18_s30 = int_to_ptr.vmem [resolvable:$true] %s17_s30 }
  0x15   :  { %p3644_p9 = scmp.lt.u32.totalorder %s3640_s7, %s4348_s0 }
  0x17   :  { %p3646_p10 = pnand %p3644_p9, %p3641_p8 }
  0x19   :  { %3649 = shalt.err (!%p3646_p10)
}
  0x1a   :  { %s3650_s12 = scalar_lea.vmem %s18_s30, 512  ;;  %p3655_p12 = scmp.lt.s32.totalorder %s18_s30, %s18_s30 }
  0x1b   :  { %p3651_p11 = scmp.ne.s32.totalorder %s18_s30, %s3650_s12  ;;  %p3656_p13 = scmp.lt.s32.totalorder %s3650_s12, %s3650_s12 }
  0x1d   :  { %p3657_p0 = por %p3656_p13, %p3655_p12 }
  0x1f   :  { %p3658_p1 = pnand %p3657_p0, %p3651_p11 }
  0x21   :  { %3661 = shalt.err (!%p3658_p1)
}
  0x22   :  { %s3716_s1 = smov 64   ;;  %s3717_s13 = smov 4  }
  0x23   :  { %23 = dma.hbm_to_vmem [thread:$0]  %s4348_s0, 512, %s18_s30, [#allocation6], %s3716_s1, %s3716_s1, %s3717_s13  }
  0x24   :  { %s3718_s16 = smov [#allocation10]   ;;  %s3662_s20 = scalar_lea.hbm %s4350_s2, 4096 }
  0x25   :  { %s41_s17 = sshll.u32 %s3718_s16, 4  ;;  %p3663_p2 = scmp.ne.s32.totalorder %s4350_s2, %s3662_s20  ;;  %s42_s17 = int_to_ptr.vmem [resolvable:$true] %s41_s17 }
  0x26   :  { %p3666_p3 = scmp.lt.u32.totalorder %s3662_s20, %s4350_s2 }
  0x28   :  { %p3668_p4 = pnand %p3666_p3, %p3663_p2 }
  0x2a   :  { %3671 = shalt.err (!%p3668_p4)
}
  0x2b   :  { %s3672_s27 = scalar_lea.vmem %s42_s17, 4096  ;;  %p3677_p6 = scmp.lt.s32.totalorder %s42_s17, %s42_s17 }
  0x2c   :  { %p3673_p5 = scmp.ne.s32.totalorder %s42_s17, %s3672_s27  ;;  %p3678_p7 = scmp.lt.s32.totalorder %s3672_s27, %s3672_s27 }
  0x2e   :  { %p3679_p8 = por %p3678_p7, %p3677_p6 }
  0x30   :  { %p3680_p9 = pnand %p3679_p8, %p3673_p5 }
  0x32   :  { %3683 = shalt.err (!%p3680_p9)
}
  0x33   :  { %47 = dma.hbm_to_vmem [thread:$0]  %s4350_s2, 4096, %s42_s17, [#allocation9], %s3713_s25, %s3713_s25, %s3714_s26  }
  0x34   :  { %3706 = dma.done.wait [#allocation6], 512  }
  0x35   :  { %3707 = vsyncadd [#allocation6], 4294966784 }
  0x36   :  { %3708 = dma.done.wait [#allocation9], 8192  }
  0x37   :  { %3709 = vsyncadd [#allocation9], 4294959104  ;;  %v4353_v0 = vmov 0   ;;  %v3342_v1 = vld [vmem:[#allocation8 + $0x4] ss:$16 sps:$4 sm:$0xff]   ;;  %v3403_v44 = vld [vmem:[#allocation5 + $0x8] sm:$0xff]  }
  0x38   :  { %344 = vmatprep.mubr.bf16.mxu0 %v4353_v0  ;;  %417 = vmatprep.mubr.bf16.mxu1 %v4353_v0  ;;  %v3344_v2 = vld [vmem:[#allocation8 + $0xc] ss:$16 sps:$4 sm:$0xff]   ;;  %v3346_v3 = vld [vmem:[#allocation8] ss:$16 sps:$4 sm:$0xff]   ;;  %v3347_v4 = vld [vmem:[#allocation8 + $0x8] ss:$16 sps:$4 sm:$0xff]  }
  0x39   :  { %312 = vmatprep.subr.bf16.mxu0 %v3342_v1  ;;  %385 = vmatprep.subr.bf16.mxu1 %v3344_v2  ;;  %v3348_v5 = vld [vmem:[#allocation8 + $0x24] ss:$16 sps:$4 sm:$0xff]   ;;  %v3350_v6 = vld [vmem:[#allocation8 + $0x2c] ss:$16 sps:$4 sm:$0xff]   ;;  %v3352_v7 = vld [vmem:[#allocation8 + $0x20] ss:$16 sps:$4 sm:$0xff]  }
  0x3a   :  { %313 = vmatpush1.bf16.msra.mxu0 %v3346_v3  ;;  %386 = vmatpush1.bf16.msra.mxu1 %v3347_v4  ;;  %v3353_v8 = vld [vmem:[#allocation8 + $0x28] ss:$16 sps:$4 sm:$0xff]   ;;  %v3354_v9 = vld [vmem:[#allocation8 + $0x44] ss:$16 sps:$4 sm:$0xff]   ;;  %v3356_v10 = vld [vmem:[#allocation8 + $0x4c] ss:$16 sps:$4 sm:$0xff]  }
  0x3b   :  { %314 = vmatprep.subr.bf16.mxu0 %v3348_v5  ;;  %387 = vmatprep.subr.bf16.mxu1 %v3350_v6  ;;  %v3358_v11 = vld [vmem:[#allocation8 + $0x40] ss:$16 sps:$4 sm:$0xff]   ;;  %v3359_v12 = vld [vmem:[#allocation8 + $0x48] ss:$16 sps:$4 sm:$0xff]   ;;  %v3360_v13 = vld [vmem:[#allocation8 + $0x64] ss:$16 sps:$4 sm:$0xff]  }
  0x3c   :  { %v3362_v14 = vld [vmem:[#allocation8 + $0x6c] ss:$16 sps:$4 sm:$0xff]   ;;  %v3364_v15 = vld [vmem:[#allocation8 + $0x60] ss:$16 sps:$4 sm:$0xff]   ;;  %v3365_v16 = vld [vmem:[#allocation8 + $0x68] ss:$16 sps:$4 sm:$0xff]  }
  0x3d   :  { %v3366_v17 = vld [vmem:[#allocation8 + $0x84] ss:$16 sps:$4 sm:$0xff]   ;;  %v3368_v18 = vld [vmem:[#allocation8 + $0x8c] ss:$16 sps:$4 sm:$0xff]   ;;  %v3370_v19 = vld [vmem:[#allocation8 + $0x80] ss:$16 sps:$4 sm:$0xff]  }
  0x3e   :  { %315 = vmatpush1.bf16.msra.mxu0 %v3352_v7  ;;  %388 = vmatpush1.bf16.msra.mxu1 %v3353_v8  ;;  %v3371_v20 = vld [vmem:[#allocation8 + $0x88] ss:$16 sps:$4 sm:$0xff]   ;;  %v3372_v21 = vld [vmem:[#allocation8 + $0xa4] ss:$16 sps:$4 sm:$0xff]   ;;  %v3374_v22 = vld [vmem:[#allocation8 + $0xac] ss:$16 sps:$4 sm:$0xff]   ;;  %v108_v7 = vlaneseq }
  0x3f   :  { %316 = vmatprep.subr.bf16.mxu0 %v3354_v9  ;;  %389 = vmatprep.subr.bf16.mxu1 %v3356_v10  ;;  %v3376_v23 = vld [vmem:[#allocation8 + $0xa0] ss:$16 sps:$4 sm:$0xff]   ;;  %v3377_v24 = vld [vmem:[#allocation8 + $0xa8] ss:$16 sps:$4 sm:$0xff]   ;;  %v3378_v25 = vld [vmem:[#allocation8 + $0xc4] ss:$16 sps:$4 sm:$0xff]  }
  0x40   :  { %v3380_v26 = vld [vmem:[#allocation8 + $0xcc] ss:$16 sps:$4 sm:$0xff]   ;;  %v3382_v27 = vld [vmem:[#allocation8 + $0xc0] ss:$16 sps:$4 sm:$0xff]   ;;  %v3383_v28 = vld [vmem:[#allocation8 + $0xc8] ss:$16 sps:$4 sm:$0xff]  }
  0x41   :  { %v3384_v29 = vld [vmem:[#allocation8 + $0xe4] ss:$16 sps:$4 sm:$0xff]   ;;  %v3386_v30 = vld [vmem:[#allocation8 + $0xec] ss:$16 sps:$4 sm:$0xff]   ;;  %v3388_v31 = vld [vmem:[#allocation8 + $0xe0] ss:$16 sps:$4 sm:$0xff]  }
  0x42   :  { %317 = vmatpush1.bf16.msra.mxu0 %v3358_v11  ;;  %390 = vmatpush1.bf16.msra.mxu1 %v3359_v12  ;;  %v3389_v32 = vld [vmem:[#allocation8 + $0xe8] ss:$16 sps:$4 sm:$0xff]   ;;  %v3793_v33 = vld [vmem:[#allocation10 + $0x4] ss:$16 sps:$4 sm:$0xff]   ;;  %v3795_v34 = vld [vmem:[#allocation10 + $0xc] ss:$16 sps:$4 sm:$0xff]  }
  0x43   :  { %318 = vmatprep.subr.bf16.mxu0 %v3360_v13  ;;  %391 = vmatprep.subr.bf16.mxu1 %v3362_v14  ;;  %v3390_v35 = vld [vmem:[#allocation5] sm:$0xff]   ;;  %v3799_v37 = vld [vmem:[#allocation10 + $0x8] ss:$16 sps:$4 sm:$0xff]   ;;  %v3805_v39 = vld [vmem:[#allocation10 + $0x2c] ss:$16 sps:$4 sm:$0xff]   ;;  %v3720_v6 = vmov 0.0|0.0  }
  0x44   :  { %v3797_v36 = vld [vmem:[#allocation10] ss:$16 sps:$4 sm:$0xff]   ;;  %v3803_v38 = vld [vmem:[#allocation10 + $0x24] ss:$16 sps:$4 sm:$0xff]   ;;  %v3811_v41 = vld [vmem:[#allocation10 + $0x28] ss:$16 sps:$4 sm:$0xff]  }
  0x45   :  { %v3807_v40 = vld [vmem:[#allocation10 + $0x20] ss:$16 sps:$4 sm:$0xff]   ;;  %v3815_v42 = vld [vmem:[#allocation10 + $0x44] ss:$16 sps:$4 sm:$0xff]   ;;  %v3817_v43 = vld [vmem:[#allocation10 + $0x4c] ss:$16 sps:$4 sm:$0xff]  }
  0x46   :  { %319 = vmatpush1.bf16.msra.mxu0 %v3364_v15  ;;  %392 = vmatpush1.bf16.msra.mxu1 %v3365_v16  ;;  %v3821_v45 = vld [vmem:[#allocation10 + $0x40] ss:$16 sps:$4 sm:$0xff]   ;;  %v3823_v46 = vld [vmem:[#allocation10 + $0x48] ss:$16 sps:$4 sm:$0xff]   ;;  %v3827_v47 = vld [vmem:[#allocation10 + $0x64] ss:$16 sps:$4 sm:$0xff]  }
  0x47   :  { %320 = vmatprep.subr.bf16.mxu0 %v3366_v17  ;;  %393 = vmatprep.subr.bf16.mxu1 %v3368_v18  ;;  %v3831_v48 = vld [vmem:[#allocation10 + $0x6c] ss:$16 sps:$4 sm:$0xff]   ;;  %v3833_v49 = vld [vmem:[#allocation10 + $0x60] ss:$16 sps:$4 sm:$0xff]   ;;  %v3835_v50 = vld [vmem:[#allocation10 + $0x68] ss:$16 sps:$4 sm:$0xff]  }
  0x48   :  { %v3839_v51 = vld [vmem:[#allocation10 + $0x84] ss:$16 sps:$4 sm:$0xff]   ;;  %v3843_v52 = vld [vmem:[#allocation10 + $0x8c] ss:$16 sps:$4 sm:$0xff]   ;;  %v3847_v54 = vld [vmem:[#allocation10 + $0x80] ss:$16 sps:$4 sm:$0xff]  }
  0x49   :  { %v3416_v53 = vld [vmem:[#allocation5 + $0x10] sm:$0xff]   ;;  %v3849_v55 = vld [vmem:[#allocation10 + $0x88] ss:$16 sps:$4 sm:$0xff]   ;;  %v3853_v57 = vld [vmem:[#allocation10 + $0xac] ss:$16 sps:$4 sm:$0xff]   ;;  %v109_v8 = vshrl.u32 %v108_v7, 7 }
  0x4a   :  { %321 = vmatpush1.bf16.msra.mxu0 %v3370_v19  ;;  %394 = vmatpush1.bf16.msra.mxu1 %v3371_v20  ;;  %v3851_v56 = vld [vmem:[#allocation10 + $0xa4] ss:$16 sps:$4 sm:$0xff]   ;;  %v3859_v58 = vld [vmem:[#allocation10 + $0xa0] ss:$16 sps:$4 sm:$0xff]   ;;  %v3861_v59 = vld [vmem:[#allocation10 + $0xa8] ss:$16 sps:$4 sm:$0xff]  }
  0x4b   :  { %322 = vmatprep.subr.bf16.mxu0 %v3372_v21  ;;  %395 = vmatprep.subr.bf16.mxu1 %v3374_v22  ;;  %v3863_v60 = vld [vmem:[#allocation10 + $0xc4] ss:$16 sps:$4 sm:$0xff]   ;;  %v3865_v61 = vld [vmem:[#allocation10 + $0xcc] ss:$16 sps:$4 sm:$0xff]   ;;  %v3873_v63 = vld [vmem:[#allocation10 + $0xc0] ss:$16 sps:$4 sm:$0xff]  }
  0x4c   :  { %v3429_v62 = vld [vmem:[#allocation5 + $0x18] sm:$0xff]   ;;  %v3877_v2 = vld [vmem:[#allocation10 + $0xe4] ss:$16 sps:$4 sm:$0xff]   ;;  %v3887_v4 = vld [vmem:[#allocation10 + $0xe0] ss:$16 sps:$4 sm:$0xff]   ;;  %v118_v9 = vsub.s32 2, %v109_v8 }
  0x4d   :  { %v3875_v1 = vld [vmem:[#allocation10 + $0xc8] ss:$16 sps:$4 sm:$0xff]   ;;  %v3883_v3 = vld [vmem:[#allocation10 + $0xec] ss:$16 sps:$4 sm:$0xff]   ;;  %v122_v10 = vsub.s32 3, %v109_v8  ;;  %v110_v11 = vsub.s32 0, %v109_v8 }
  0x4e   :  { %323 = vmatpush1.bf16.msra.mxu0 %v3376_v23  ;;  %396 = vmatpush1.bf16.msra.mxu1 %v3377_v24  ;;  %v3889_v5 = vld [vmem:[#allocation10 + $0xe8] ss:$16 sps:$4 sm:$0xff]   ;;  %v106_v12 = vld [vmem:[%s4351_s3] sm:$0xf]  ;;  %v114_v13 = vsub.s32 1, %v109_v8  ;;  %s3721_s3 = smov [#allocation11]  }
  0x4f   :  { %324 = vmatprep.subr.bf16.mxu0 %v3378_v25  ;;  %397 = vmatprep.subr.bf16.mxu1 %v3380_v26  ;;  %v3936_v14 = vrot.slane %v106_v12, %v118_v9  ;;  %v3942_v17 = vrot.slane %v106_v12, %v122_v10  ;;  %v111_v18 = vrot.slane %v106_v12, %v110_v11  ;;  %s2994_s26 = sshll.u32 %s3721_s3, 4  ;;  %s2995_s26 = int_to_ptr.vmem [resolvable:$true] %s2994_s26 }
  0x50   :  { %v115_v21 = vrot.slane %v106_v12, %v114_v13  ;;  %s3684_s29 = scalar_lea.vmem %s2995_s26, 1024  ;;  %p3689_p11 = scmp.lt.s32.totalorder %s2995_s26, %s2995_s26 }
  0x51   :  { %p3685_p10 = scmp.ne.s32.totalorder %s2995_s26, %s3684_s29  ;;  %p3690_p12 = scmp.lt.s32.totalorder %s3684_s29, %s3684_s29 }
  0x52   :  { %325 = vmatpush1.bf16.msra.mxu0 %v3382_v27  ;;  %398 = vmatpush1.bf16.msra.mxu1 %v3383_v28 }
  0x53   :  { %326 = vmatprep.subr.bf16.mxu0 %v3384_v29  ;;  %399 = vmatprep.subr.bf16.mxu1 %v3386_v30  ;;  %p3691_p13 = por %p3690_p12, %p3689_p11 }
  0x55   :  { %p3692_p0 = pnand %p3691_p13, %p3685_p10 }
  0x56   :  { %327 = vmatpush1.bf16.msra.mxu0 %v3388_v31  ;;  %400 = vmatpush1.bf16.msra.mxu1 %v3389_v32 }
  0x57   :  { %692 = vmatprep.subr.bf16.mxu0 %v3793_v33  ;;  %733 = vmatprep.subr.bf16.mxu1 %v3795_v34 }
  0x59   :  { %345 = vmatmul.mubr.bf16.vlgmr.msra.gmra.mrb[0].mxu0 %v3390_v35  ;;  %418 = vmatmul.mubr.bf16.vlgmr.msra.gmra.mrb[0].mxu1 %v3390_v35 }
  0x5a   :  { %693 = vmatpush1.bf16.msra.mxu0 %v3797_v36  ;;  %734 = vmatpush1.bf16.msra.mxu1 %v3799_v37 }
  0x5b   :  { %694 = vmatprep.subr.bf16.mxu0 %v3803_v38  ;;  %735 = vmatprep.subr.bf16.mxu1 %v3805_v39 }
  0x5c   :  { %354 = vmatprep.mubr.bf16.mxu0 %v4353_v0  ;;  %427 = vmatprep.mubr.bf16.mxu1 %v4353_v0 }
  0x5e   :  { %695 = vmatpush1.bf16.msra.mxu0 %v3807_v40  ;;  %736 = vmatpush1.bf16.msra.mxu1 %v3811_v41 }
  0x5f   :  { %696 = vmatprep.subr.bf16.mxu0 %v3815_v42  ;;  %737 = vmatprep.subr.bf16.mxu1 %v3817_v43 }
  0x61   :  { %355 = vmatmul.mubr.bf16.gmra.mrb[4].mxu0 %v3403_v44  ;;  %428 = vmatmul.mubr.bf16.gmra.mrb[4].mxu1 %v3403_v44 }
  0x62   :  { %697 = vmatpush1.bf16.msra.mxu0 %v3821_v45  ;;  %738 = vmatpush1.bf16.msra.mxu1 %v3823_v46 }
  0x63   :  { %698 = vmatprep.subr.bf16.mxu0 %v3827_v47  ;;  %739 = vmatprep.subr.bf16.mxu1 %v3831_v48 }
  0x64   :  { %364 = vmatprep.mubr.bf16.mxu0 %v4353_v0  ;;  %437 = vmatprep.mubr.bf16.mxu1 %v4353_v0 }
  0x66   :  { %699 = vmatpush1.bf16.msra.mxu0 %v3833_v49  ;;  %740 = vmatpush1.bf16.msra.mxu1 %v3835_v50 }
  0x67   :  { %700 = vmatprep.subr.bf16.mxu0 %v3839_v51  ;;  %741 = vmatprep.subr.bf16.mxu1 %v3843_v52 }
  0x69   :  { %365 = vmatmul.mubr.bf16.gmra.mrb[8].mxu0 %v3416_v53  ;;  %438 = vmatmul.mubr.bf16.gmra.mrb[8].mxu1 %v3416_v53 }
  0x6a   :  { %701 = vmatpush1.bf16.msra.mxu0 %v3847_v54  ;;  %742 = vmatpush1.bf16.msra.mxu1 %v3849_v55 }
  0x6b   :  { %702 = vmatprep.subr.bf16.mxu0 %v3851_v56  ;;  %743 = vmatprep.subr.bf16.mxu1 %v3853_v57 }
  0x6c   :  { %374 = vmatprep.mubr.bf16.mxu0 %v4353_v0  ;;  %447 = vmatprep.mubr.bf16.mxu1 %v4353_v0 }
  0x6e   :  { %703 = vmatpush1.bf16.msra.mxu0 %v3859_v58  ;;  %744 = vmatpush1.bf16.msra.mxu1 %v3861_v59 }
  0x6f   :  { %704 = vmatprep.subr.bf16.mxu0 %v3863_v60  ;;  %745 = vmatprep.subr.bf16.mxu1 %v3865_v61 }
  0x71   :  { %375 = vmatmul.mubr.bf16.gmra.mrb[12].mxu0 %v3429_v62  ;;  %448 = vmatmul.mubr.bf16.gmra.mrb[12].mxu1 %v3429_v62 }
  0x72   :  { %705 = vmatpush1.bf16.msra.mxu0 %v3873_v63  ;;  %746 = vmatpush1.bf16.msra.mxu1 %v3875_v1 }
  0x73   :  { %706 = vmatprep.subr.bf16.mxu0 %v3877_v2  ;;  %747 = vmatprep.subr.bf16.mxu1 %v3883_v3 }
  0x74   :  { %724 = vmatprep.mubr.bf16.mxu0 %v4353_v0  ;;  %765 = vmatprep.mubr.bf16.mxu1 %v4353_v0 }
  0x76   :  { %707 = vmatpush1.bf16.msra.mxu0 %v3887_v4  ;;  %748 = vmatpush1.bf16.msra.mxu1 %v3889_v5 }
  0x77   :  { %1003 = vmatprep.subr.bf16.mxu0 %v3793_v33  ;;  %1044 = vmatprep.subr.bf16.mxu1 %v3795_v34 }
  0x79   :  { %725 = vmatmul.mubr.bf16.vlgmr.msra.gmra.mrb[16].mxu0 %v3720_v6  ;;  %766 = vmatmul.mubr.bf16.vlgmr.msra.gmra.mrb[16].mxu1 %v3720_v6 }
  0x7a   :  { %1004 = vmatpush1.bf16.msra.mxu0 %v3797_v36  ;;  %1045 = vmatpush1.bf16.msra.mxu1 %v3799_v37 }
  0x7b   :  { %1005 = vmatprep.subr.bf16.mxu0 %v3803_v38  ;;  %1046 = vmatprep.subr.bf16.mxu1 %v3805_v39 }
  0x7c   :  { %1035 = vmatprep.mubr.bf16.mxu0 %v4353_v0  ;;  %1076 = vmatprep.mubr.bf16.mxu1 %v4353_v0 }
  0x7e   :  { %1006 = vmatpush1.bf16.msra.mxu0 %v3807_v40  ;;  %1047 = vmatpush1.bf16.msra.mxu1 %v3811_v41 }
  0x7f   :  { %1007 = vmatprep.subr.bf16.mxu0 %v3815_v42  ;;  %1048 = vmatprep.subr.bf16.mxu1 %v3817_v43 }
  0x82   :  { %1008 = vmatpush1.bf16.msra.mxu0 %v3821_v45  ;;  %1049 = vmatpush1.bf16.msra.mxu1 %v3823_v46 }
  0x83   :  { %1009 = vmatprep.subr.bf16.mxu0 %v3827_v47  ;;  %1050 = vmatprep.subr.bf16.mxu1 %v3831_v48 }
  0x86   :  { %1010 = vmatpush1.bf16.msra.mxu0 %v3833_v49  ;;  %1051 = vmatpush1.bf16.msra.mxu1 %v3835_v50 }
  0x87   :  { %1011 = vmatprep.subr.bf16.mxu0 %v3839_v51  ;;  %1052 = vmatprep.subr.bf16.mxu1 %v3843_v52 }
  0x8a   :  { %1012 = vmatpush1.bf16.msra.mxu0 %v3847_v54  ;;  %1053 = vmatpush1.bf16.msra.mxu1 %v3849_v55 }
  0x8b   :  { %1013 = vmatprep.subr.bf16.mxu0 %v3851_v56  ;;  %1054 = vmatprep.subr.bf16.mxu1 %v3853_v57 }
  0x8e   :  { %1014 = vmatpush1.bf16.msra.mxu0 %v3859_v58  ;;  %1055 = vmatpush1.bf16.msra.mxu1 %v3861_v59 }
  0x8f   :  { %1015 = vmatprep.subr.bf16.mxu0 %v3863_v60  ;;  %1056 = vmatprep.subr.bf16.mxu1 %v3865_v61 }
  0x92   :  { %1016 = vmatpush1.bf16.msra.mxu0 %v3873_v63  ;;  %1057 = vmatpush1.bf16.msra.mxu1 %v3875_v1 }
  0x93   :  { %1017 = vmatprep.subr.bf16.mxu0 %v3877_v2  ;;  %1058 = vmatprep.subr.bf16.mxu1 %v3883_v3 }
  0x96   :  { %1018 = vmatpush1.bf16.msra.mxu0 %v3887_v4  ;;  %1059 = vmatpush1.bf16.msra.mxu1 %v3889_v5 }
  0x97   :  { %1315 = vmatprep.subr.bf16.mxu0 %v3793_v33  ;;  %1356 = vmatprep.subr.bf16.mxu1 %v3795_v34 }
 0x12c   :  { %v3938_v15 = vpop.f32.mrb[0].mxu0  ;;  %v3940_v16 = vpop.f32.mrb[0].mxu1 }
 0x12d   :  { %v348_v19 = vpop.f32.mrb[1].mxu0  ;;  %v421_v20 = vpop.f32.mrb[1].mxu1 }
 0x12e   :  { %v350_v22 = vpop.f32.mrb[2].mxu0  ;;  %v423_v23 = vpop.f32.mrb[2].mxu1 }
 0x12f   :  { %v3944_v24 = vadd.f32 %v350_v22, %v111_v18  ;;  %v352_v25 = vpop.f32.mrb[3].mxu0  ;;  %v3947_v26 = vadd.f32 %v423_v23, %v3936_v14  ;;  %v425_v27 = vpop.f32.mrb[3].mxu1 }
 0x130   :  { %v3949_v28 = vadd.f32 %v352_v25, %v115_v21  ;;  %v3952_v29 = vadd.f32 %v425_v27, %v3942_v17 }
 0x134   :  { %v356_v30 = vpop.f32.mrb[4].mxu0  ;;  %v429_v31 = vpop.f32.mrb[4].mxu1 }
 0x135   :  { %v3954_v32 = vadd.f32 %v356_v30, %v111_v18  ;;  %v358_v35 = vpop.f32.mrb[5].mxu0  ;;  %v3957_v44 = vadd.f32 %v429_v31, %v3936_v14  ;;  %v431_v53 = vpop.f32.mrb[5].mxu1 }
 0x136   :  { %v3959_v62 = vadd.f32 %v358_v35, %v115_v21  ;;  %v360_v6 = vpop.f32.mrb[6].mxu0  ;;  %v3962_v7 = vadd.f32 %v431_v53, %v3942_v17  ;;  %v433_v8 = vpop.f32.mrb[6].mxu1 }
 0x137   :  { %v3964_v9 = vadd.f32 %v360_v6, %v111_v18  ;;  %v362_v10 = vpop.f32.mrb[7].mxu0  ;;  %v3967_v11 = vadd.f32 %v433_v8, %v3936_v14  ;;  %v435_v12 = vpop.f32.mrb[7].mxu1 }
 0x138   :  { %4355 = vst [vmem:[#allocation15_spill] sm:$0xff] %v3962_v7  ;;  %v3969_v13 = vadd.f32 %v362_v10, %v115_v21  ;;  %v3972_v22 = vadd.f32 %v435_v12, %v3942_v17 }
 0x139   :  { %4356 = vst [vmem:[#allocation16_spill] sm:$0xff] %v3964_v9  ;;  %4357 = vst [vmem:[#allocation17_spill] sm:$0xff] %v3967_v11 }
 0x13a   :  { %4358 = vst [vmem:[#allocation18_spill] sm:$0xff] %v3969_v13  ;;  %4359 = vst [vmem:[#allocation19_spill] sm:$0xff] %v3972_v22 }
 0x13c   :  { %v366_v23 = vpop.f32.mrb[8].mxu0  ;;  %v439_v25 = vpop.f32.mrb[8].mxu1 }
 0x13d   :  { %v3974_v27 = vadd.f32 %v366_v23, %v111_v18  ;;  %v368_v30 = vpop.f32.mrb[9].mxu0  ;;  %v3977_v31 = vadd.f32 %v439_v25, %v3936_v14  ;;  %v441_v35 = vpop.f32.mrb[9].mxu1 }
 0x13e   :  { %v3979_v53 = vadd.f32 %v368_v30, %v115_v21  ;;  %v370_v6 = vpop.f32.mrb[10].mxu0  ;;  %v3982_v8 = vadd.f32 %v441_v35, %v3942_v17  ;;  %v443_v10 = vpop.f32.mrb[10].mxu1 }
 0x13f   :  { %4360 = vst [vmem:[#allocation20_spill] sm:$0xff] %v3974_v27  ;;  %4361 = vst [vmem:[#allocation21_spill] sm:$0xff] %v3977_v31  ;;  %v3984_v0 = vadd.f32 %v370_v6, %v111_v18  ;;  %v372_v12 = vpop.f32.mrb[11].mxu0  ;;  %v3987_v22 = vadd.f32 %v443_v10, %v3936_v14  ;;  %v445_v23 = vpop.f32.mrb[11].mxu1 }
 0x140   :  { %4362 = vst [vmem:[#allocation22_spill] sm:$0xff] %v3979_v53  ;;  %4363 = vst [vmem:[#allocation23_spill] sm:$0xff] %v3982_v8  ;;  %v3989_v27 = vadd.f32 %v372_v12, %v115_v21  ;;  %v3992_v25 = vadd.f32 %v445_v23, %v3942_v17 }
 0x141   :  { %4364 = vst [vmem:[#allocation24_spill] sm:$0xff] %v3984_v0  ;;  %4365 = vst [vmem:[#allocation25_spill] sm:$0xff] %v3987_v22 }
 0x142   :  { %4366 = vst [vmem:[#allocation26_spill] sm:$0xff] %v3989_v27  ;;  %4367 = vst [vmem:[#allocation27_spill] sm:$0xff] %v3992_v25 }
 0x144   :  { %v376_v31 = vpop.f32.mrb[12].mxu0  ;;  %v449_v30 = vpop.f32.mrb[12].mxu1 }
 0x145   :  { %v3994_v53 = vadd.f32 %v376_v31, %v111_v18  ;;  %v378_v13 = vpop.f32.mrb[13].mxu0  ;;  %v3997_v35 = vadd.f32 %v449_v30, %v3936_v14  ;;  %v451_v6 = vpop.f32.mrb[13].mxu1 }
 0x146   :  { %v3999_v0 = vadd.f32 %v378_v13, %v115_v21  ;;  %v380_v8 = vpop.f32.mrb[14].mxu0  ;;  %v4002_v10 = vadd.f32 %v451_v6, %v3942_v17  ;;  %v453_v12 = vpop.f32.mrb[14].mxu1  ;;  %v347_v13 = vadd.f32 %v3938_v15, %v111_v18  ;;  %v349_v6 = vadd.f32 %v348_v19, %v115_v21 }
 0x147   :  { %4368 = vst [vmem:[#allocation28_spill] sm:$0xff] %v3994_v53  ;;  %4369 = vst [vmem:[#allocation29_spill] sm:$0xff] %v3997_v35  ;;  %v4004_v27 = vadd.f32 %v380_v8, %v111_v18  ;;  %v382_v23 = vpop.f32.mrb[15].mxu0  ;;  %v4007_v25 = vadd.f32 %v453_v12, %v3936_v14  ;;  %v455_v31 = vpop.f32.mrb[15].mxu1 }
 0x148   :  { %4370 = vst [vmem:[#allocation30_spill] sm:$0xff] %v3999_v0  ;;  %4371 = vst [vmem:[#allocation31_spill] sm:$0xff] %v4002_v10  ;;  %v4009_v53 = vadd.f32 %v382_v23, %v115_v21  ;;  %v4012_v30 = vadd.f32 %v455_v31, %v3942_v17  ;;  %v420_v0 = vadd.f32 %v3940_v16, %v3936_v14 }
 0x149   :  { %4372 = vst [vmem:[#allocation32_spill] sm:$0xff] %v4004_v27  ;;  %4373 = vst [vmem:[#allocation33_spill] sm:$0xff] %v4007_v25  ;;  %v422_v10 = vadd.f32 %v421_v20, %v3942_v17 }
 0x14a   :  { %4374 = vst [vmem:[#allocation34_spill] sm:$0xff] %v4009_v53  ;;  %4375 = vst [vmem:[#allocation35_spill] sm:$0xff] %v4012_v30 }
 0x14c   :  { %v726_v8 = vpop.f32.mrb[16].mxu0  ;;  %v767_v27 = vpop.f32.mrb[16].mxu1 }
 0x14d   :  { %v774_v35 = vadd.f32 %v726_v8, %v347_v13  ;;  %v776_v22 = vadd.f32 %v767_v27, %v420_v0  ;;  %v728_v12 = vpop.f32.mrb[17].mxu0  ;;  %v769_v25 = vpop.f32.mrb[17].mxu1 }
 0x14e   :  { %v775_v11 = vadd.f32 %v728_v12, %v349_v6  ;;  %v777_v23 = vadd.f32 %v769_v25, %v422_v10  ;;  %v730_v53 = vpop.f32.mrb[18].mxu0  ;;  %v771_v9 = vpop.f32.mrb[18].mxu1 }
 0x14f   :  { %v3082_v31 = vmul.f32 -1.442695, %v774_v35  ;;  %v731_v30 = vpop.f32.mrb[19].mxu0  ;;  %v772_v7 = vpop.f32.mrb[19].mxu1 }
 0x150   :  { %v3083_v15 = vmul.f32 -1.442695, %v775_v11  ;;  %v3084_v14 = vmul.f32 -1.442695, %v777_v23  ;;  %v4376_v30 = vmov 0  }
 0x151   :  { %3490 = vpow2.f32 %v3082_v31 }
 0x152   :  { %3492 = vpow2.f32 %v3083_v15 }
 0x153   :  { %3494 = vpow2.f32 %v3084_v14 }
 0x154   :  { %3496 = vtanh.f32 %v776_v22 }
 0x15b   :  { %v3491_v16 = vpop.eup %3490 }
 0x15c   :  { %v3493_v18 = vpop.eup %3492  ;;  %v781_v17 = vadd.f32 1.0, %v3491_v16 }
 0x15d   :  { %v787_v19 = vadd.f32 1.0, %v3493_v18  ;;  %v3495_v0 = vpop.eup %3494 }
 0x15e   :  { %3498 = vrcp.f32 %v781_v17  ;;  %v3497_v20 = vpop.eup %3496  ;;  %v794_v53 = vadd.f32 1.0, %v3495_v0 }
 0x15f   :  { %3500 = vrcp.f32 %v787_v19 }
 0x160   :  { %3502 = vrcp.f32 %v794_v53 }
 0x168   :  { %v3499_v21 = vpop.eup %3498 }
 0x169   :  { %v3501_v27 = vpop.eup %3500  ;;  %v798_v9 = vmul.f32 %v3499_v21, %v3497_v20 }
 0x16a   :  { %v797_v25 = vmul.f32 0.0, %v3501_v27  ;;  %v3503_v11 = vpop.eup %3502 }
 0x16c   :  { %v4018_v7 = vadd.f32 %v798_v9, %v797_v25 }
 0x16e   :  { %3504 = vtanh.f32 %v4018_v7 }
 0x178   :  { %v3505_v35 = vpop.eup %3504 }
 0x179   :  { %v801_v10 = vmul.f32 %v3505_v35, %v3503_v11 }
 0x17b   :  { %802 = vst [vmem:[#allocation11] sm:$0xff] %v801_v10  ;;  %v810_v22 = vpack.c.bf16 %v801_v10, %v801_v10 }
 0x17d   :  { %1036 = vmatmul.mubr.bf16.vlgmr.msra.gmra.mrb[20].mxu0 %v810_v22  ;;  %1077 = vmatmul.mubr.bf16.vlgmr.msra.gmra.mrb[20].mxu1 %v810_v22 }
 0x17e   :  { %1316 = vmatpush1.bf16.msra.mxu0 %v3797_v36  ;;  %1357 = vmatpush1.bf16.msra.mxu1 %v3799_v37 }
 0x17f   :  { %1317 = vmatprep.subr.bf16.mxu0 %v3803_v38  ;;  %1358 = vmatprep.subr.bf16.mxu1 %v3805_v39 }
 0x180   :  { %1347 = vmatprep.mubr.bf16.mxu0 %v4376_v30  ;;  %1388 = vmatprep.mubr.bf16.mxu1 %v4376_v30 }
 0x182   :  { %1318 = vmatpush1.bf16.msra.mxu0 %v3807_v40  ;;  %1359 = vmatpush1.bf16.msra.mxu1 %v3811_v41 }
 0x183   :  { %1319 = vmatprep.subr.bf16.mxu0 %v3815_v42  ;;  %1360 = vmatprep.subr.bf16.mxu1 %v3817_v43 }
 0x186   :  { %1320 = vmatpush1.bf16.msra.mxu0 %v3821_v45  ;;  %1361 = vmatpush1.bf16.msra.mxu1 %v3823_v46 }
 0x187   :  { %1321 = vmatprep.subr.bf16.mxu0 %v3827_v47  ;;  %1362 = vmatprep.subr.bf16.mxu1 %v3831_v48 }
 0x18a   :  { %1322 = vmatpush1.bf16.msra.mxu0 %v3833_v49  ;;  %1363 = vmatpush1.bf16.msra.mxu1 %v3835_v50 }
 0x18b   :  { %1323 = vmatprep.subr.bf16.mxu0 %v3839_v51  ;;  %1364 = vmatprep.subr.bf16.mxu1 %v3843_v52 }
 0x18e   :  { %1324 = vmatpush1.bf16.msra.mxu0 %v3847_v54  ;;  %1365 = vmatpush1.bf16.msra.mxu1 %v3849_v55 }
 0x18f   :  { %1325 = vmatprep.subr.bf16.mxu0 %v3851_v56  ;;  %1366 = vmatprep.subr.bf16.mxu1 %v3853_v57 }
 0x192   :  { %1326 = vmatpush1.bf16.msra.mxu0 %v3859_v58  ;;  %1367 = vmatpush1.bf16.msra.mxu1 %v3861_v59 }
 0x193   :  { %1327 = vmatprep.subr.bf16.mxu0 %v3863_v60  ;;  %1368 = vmatprep.subr.bf16.mxu1 %v3865_v61 }
 0x196   :  { %1328 = vmatpush1.bf16.msra.mxu0 %v3873_v63  ;;  %1369 = vmatpush1.bf16.msra.mxu1 %v3875_v1 }
 0x197   :  { %1329 = vmatprep.subr.bf16.mxu0 %v3877_v2  ;;  %1370 = vmatprep.subr.bf16.mxu1 %v3883_v3 }
 0x19a   :  { %1330 = vmatpush1.bf16.msra.mxu0 %v3887_v4  ;;  %1371 = vmatpush1.bf16.msra.mxu1 %v3889_v5 }
 0x19b   :  { %1627 = vmatprep.subr.bf16.mxu0 %v3793_v33  ;;  %1668 = vmatprep.subr.bf16.mxu1 %v3795_v34 }
 0x250   :  { %v1037_v13 = vpop.f32.mrb[20].mxu0  ;;  %v1078_v6 = vpop.f32.mrb[20].mxu1 }
 0x251   :  { %v1085_v8 = vadd.f32 %v1037_v13, %v3944_v24  ;;  %v1087_v12 = vadd.f32 %v1078_v6, %v3947_v26  ;;  %v1039_v23 = vpop.f32.mrb[21].mxu0  ;;  %v1080_v31 = vpop.f32.mrb[21].mxu1 }
 0x252   :  { %v1086_v15 = vadd.f32 %v1039_v23, %v3949_v28  ;;  %v1088_v14 = vadd.f32 %v1080_v31, %v3952_v29  ;;  %v1041_v16 = vpop.f32.mrb[22].mxu0  ;;  %v1082_v18 = vpop.f32.mrb[22].mxu1  ;;  %v4117_v23 = vld [vmem:[#allocation10 + $0x24] ss:$16 sps:$4 sm:$0xff]   ;;  %v4119_v31 = vld [vmem:[#allocation10 + $0x2c] ss:$16 sps:$4 sm:$0xff]  }
 0x253   :  { %v3117_v17 = vmul.f32 -1.442695, %v1085_v8  ;;  %v1042_v19 = vpop.f32.mrb[23].mxu0  ;;  %v1083_v0 = vpop.f32.mrb[23].mxu1  ;;  %v4109_v8 = vld [vmem:[#allocation10] ss:$16 sps:$4 sm:$0xff]  }
 0x254   :  { %v3118_v33 = vmul.f32 -1.442695, %v1086_v15  ;;  %v3119_v34 = vmul.f32 -1.442695, %v1088_v14  ;;  %v4121_v15 = vld [vmem:[#allocation10 + $0x20] ss:$16 sps:$4 sm:$0xff]  }
 0x255   :  { %3506 = vpow2.f32 %v3117_v17  ;;  %v4123_v14 = vld [vmem:[#allocation10 + $0x28] ss:$16 sps:$4 sm:$0xff]   ;;  %v4129_v16 = vld [vmem:[#allocation10 + $0x44] ss:$16 sps:$4 sm:$0xff]   ;;  %v4131_v18 = vld [vmem:[#allocation10 + $0x4c] ss:$16 sps:$4 sm:$0xff]  }
 0x256   :  { %3508 = vpow2.f32 %v3118_v33  ;;  %v4133_v17 = vld [vmem:[#allocation10 + $0x40] ss:$16 sps:$4 sm:$0xff]   ;;  %v4135_v19 = vld [vmem:[#allocation10 + $0x48] ss:$16 sps:$4 sm:$0xff]   ;;  %v4141_v0 = vld [vmem:[#allocation10 + $0x64] ss:$16 sps:$4 sm:$0xff]  }
 0x257   :  { %3510 = vpow2.f32 %v3119_v34  ;;  %v4143_v33 = vld [vmem:[#allocation10 + $0x6c] ss:$16 sps:$4 sm:$0xff]   ;;  %v4145_v34 = vld [vmem:[#allocation10 + $0x60] ss:$16 sps:$4 sm:$0xff]  }
 0x258   :  { %3512 = vtanh.f32 %v1087_v12  ;;  %v4111_v12 = vld [vmem:[#allocation10 + $0x8] ss:$16 sps:$4 sm:$0xff]  }
 0x25f   :  { %v3507_v20 = vpop.eup %3506 }
 0x260   :  { %v3509_v21 = vpop.eup %3508  ;;  %v1092_v24 = vadd.f32 1.0, %v3507_v20  ;;  %v4147_v20 = vld [vmem:[#allocation10 + $0x68] ss:$16 sps:$4 sm:$0xff]  }
 0x261   :  { %v1098_v26 = vadd.f32 1.0, %v3509_v21  ;;  %v3511_v28 = vpop.eup %3510  ;;  %v4153_v21 = vld [vmem:[#allocation10 + $0x84] ss:$16 sps:$4 sm:$0xff]  }
 0x262   :  { %3514 = vrcp.f32 %v1092_v24  ;;  %v3513_v27 = vpop.eup %3512  ;;  %v1105_v25 = vadd.f32 1.0, %v3511_v28  ;;  %v4155_v24 = vld [vmem:[#allocation10 + $0x8c] ss:$16 sps:$4 sm:$0xff]   ;;  %v4159_v28 = vld [vmem:[#allocation10 + $0x88] ss:$16 sps:$4 sm:$0xff]  }
 0x263   :  { %3516 = vrcp.f32 %v1098_v26  ;;  %v4157_v26 = vld [vmem:[#allocation10 + $0x80] ss:$16 sps:$4 sm:$0xff]  }
 0x264   :  { %3518 = vrcp.f32 %v1105_v25  ;;  %v4174_v25 = vld [vmem:[#allocation10 + $0xc4] ss:$16 sps:$4 sm:$0xff]  }
 0x26c   :  { %v3515_v29 = vpop.eup %3514 }
 0x26d   :  { %v3517_v9 = vpop.eup %3516  ;;  %v1109_v53 = vmul.f32 %v3515_v29, %v3513_v27  ;;  %v4163_v27 = vld [vmem:[#allocation10 + $0xa4] ss:$16 sps:$4 sm:$0xff]   ;;  %v4167_v29 = vld [vmem:[#allocation10 + $0xa0] ss:$16 sps:$4 sm:$0xff]  }
 0x26e   :  { %v1108_v11 = vmul.f32 %v3517_v9, %v4018_v7  ;;  %v3519_v10 = vpop.eup %3518  ;;  %v4107_v7 = vld [vmem:[#allocation10 + $0xc] ss:$16 sps:$4 sm:$0xff]   ;;  %v4169_v9 = vld [vmem:[#allocation10 + $0xa8] ss:$16 sps:$4 sm:$0xff]  }
 0x270   :  { %v4060_v35 = vadd.f32 %v1109_v53, %v1108_v11  ;;  %v4171_v53 = vld [vmem:[#allocation10 + $0xac] ss:$16 sps:$4 sm:$0xff]  }
 0x271   :  { %v4176_v11 = vld [vmem:[#allocation10 + $0xcc] ss:$16 sps:$4 sm:$0xff]  }
 0x272   :  { %3520 = vtanh.f32 %v4060_v35 }
 0x27c   :  { %v3521_v22 = vpop.eup %3520 }
 0x27d   :  { %v1112_v13 = vmul.f32 %v3521_v22, %v3519_v10  ;;  %v4183_v10 = vld [vmem:[#allocation10 + $0xc8] ss:$16 sps:$4 sm:$0xff]   ;;  %v4187_v22 = vld [vmem:[#allocation10 + $0xe4] ss:$16 sps:$4 sm:$0xff]  }
 0x27f   :  { %1114 = vst [vmem:[#allocation11 + $0x8] sm:$0xff] %v1112_v13  ;;  %v1122_v6 = vpack.c.bf16 %v1112_v13, %v1112_v13  ;;  %v4189_v13 = vld [vmem:[#allocation10 + $0xec] ss:$16 sps:$4 sm:$0xff]  }
 0x281   :  { %1348 = vmatmul.mubr.bf16.vlgmr.msra.gmra.mrb[24].mxu0 %v1122_v6  ;;  %1389 = vmatmul.mubr.bf16.vlgmr.msra.gmra.mrb[24].mxu1 %v1122_v6  ;;  %v4193_v6 = vld [vmem:[#allocation10 + $0xe0] ss:$16 sps:$4 sm:$0xff]  }
 0x282   :  { %1628 = vmatpush1.bf16.msra.mxu0 %v3797_v36  ;;  %1669 = vmatpush1.bf16.msra.mxu1 %v3799_v37 }
 0x283   :  { %1629 = vmatprep.subr.bf16.mxu0 %v3803_v38  ;;  %1670 = vmatprep.subr.bf16.mxu1 %v3805_v39 }
 0x284   :  { %1659 = vmatprep.mubr.bf16.mxu0 %v4376_v30  ;;  %1700 = vmatprep.mubr.bf16.mxu1 %v4376_v30 }
 0x286   :  { %1630 = vmatpush1.bf16.msra.mxu0 %v3807_v40  ;;  %1671 = vmatpush1.bf16.msra.mxu1 %v3811_v41 }
 0x287   :  { %1631 = vmatprep.subr.bf16.mxu0 %v3815_v42  ;;  %1672 = vmatprep.subr.bf16.mxu1 %v3817_v43  ;;  %v4377_v43 = vld [vmem:[#allocation15_spill] sm:$0xff] }
 0x28a   :  { %1632 = vmatpush1.bf16.msra.mxu0 %v3821_v45  ;;  %1673 = vmatpush1.bf16.msra.mxu1 %v3823_v46 }
 0x28b   :  { %1633 = vmatprep.subr.bf16.mxu0 %v3827_v47  ;;  %1674 = vmatprep.subr.bf16.mxu1 %v3831_v48 }
 0x28e   :  { %1634 = vmatpush1.bf16.msra.mxu0 %v3833_v49  ;;  %1675 = vmatpush1.bf16.msra.mxu1 %v3835_v50 }
 0x28f   :  { %1635 = vmatprep.subr.bf16.mxu0 %v3839_v51  ;;  %1676 = vmatprep.subr.bf16.mxu1 %v3843_v52 }
 0x292   :  { %1636 = vmatpush1.bf16.msra.mxu0 %v3847_v54  ;;  %1677 = vmatpush1.bf16.msra.mxu1 %v3849_v55 }
 0x293   :  { %1637 = vmatprep.subr.bf16.mxu0 %v3851_v56  ;;  %1678 = vmatprep.subr.bf16.mxu1 %v3853_v57 }
 0x296   :  { %1638 = vmatpush1.bf16.msra.mxu0 %v3859_v58  ;;  %1679 = vmatpush1.bf16.msra.mxu1 %v3861_v59 }
 0x297   :  { %1639 = vmatprep.subr.bf16.mxu0 %v3863_v60  ;;  %1680 = vmatprep.subr.bf16.mxu1 %v3865_v61 }
 0x29a   :  { %1640 = vmatpush1.bf16.msra.mxu0 %v3873_v63  ;;  %1681 = vmatpush1.bf16.msra.mxu1 %v3875_v1 }
 0x29b   :  { %1641 = vmatprep.subr.bf16.mxu0 %v3877_v2  ;;  %1682 = vmatprep.subr.bf16.mxu1 %v3883_v3 }
 0x29e   :  { %1642 = vmatpush1.bf16.msra.mxu0 %v3887_v4  ;;  %1683 = vmatpush1.bf16.msra.mxu1 %v3889_v5 }
 0x29f   :  { %1980 = vmatprep.subr.bf16.mxu1 %v4107_v7 }
 0x354   :  { %v1349_v36 = vpop.f32.mrb[24].mxu0  ;;  %v1390_v37 = vpop.f32.mrb[24].mxu1 }
 0x355   :  { %v1397_v38 = vadd.f32 %v1349_v36, %v3954_v32  ;;  %v1399_v39 = vadd.f32 %v1390_v37, %v3957_v44  ;;  %v1351_v40 = vpop.f32.mrb[25].mxu0  ;;  %v1392_v41 = vpop.f32.mrb[25].mxu1  ;;  %v4195_v36 = vld [vmem:[#allocation10 + $0xe8] ss:$16 sps:$4 sm:$0xff]  }
 0x356   :  { %v1398_v42 = vadd.f32 %v1351_v40, %v3959_v62  ;;  %v1400_v45 = vadd.f32 %v1392_v41, %v4377_v43  ;;  %v1353_v46 = vpop.f32.mrb[26].mxu0  ;;  %v1394_v47 = vpop.f32.mrb[26].mxu1  ;;  %v4105_v62 = vld [vmem:[#allocation10 + $0x4] ss:$16 sps:$4 sm:$0xff]  }
 0x357   :  { %v3152_v48 = vmul.f32 -1.442695, %v1397_v38  ;;  %v1354_v49 = vpop.f32.mrb[27].mxu0  ;;  %v1395_v50 = vpop.f32.mrb[27].mxu1  ;;  %1939 = vmatprep.subr.bf16.mxu0 %v4105_v62  ;;  %v4379_v41 = vld [vmem:[#allocation17_spill] sm:$0xff]  ;;  %v4380_v46 = vld [vmem:[#allocation18_spill] sm:$0xff] }
 0x358   :  { %v3153_v51 = vmul.f32 -1.442695, %v1398_v42  ;;  %v3154_v52 = vmul.f32 -1.442695, %v1400_v45 }
 0x359   :  { %3522 = vpow2.f32 %v3152_v48  ;;  %v4381_v48 = vld [vmem:[#allocation19_spill] sm:$0xff] }
 0x35a   :  { %3524 = vpow2.f32 %v3153_v51 }
 0x35b   :  { %3526 = vpow2.f32 %v3154_v52 }
 0x35c   :  { %3528 = vtanh.f32 %v1399_v39  ;;  %v4378_v39 = vld [vmem:[#allocation16_spill] sm:$0xff] }
 0x363   :  { %v3523_v54 = vpop.eup %3522 }
 0x364   :  { %v3525_v55 = vpop.eup %3524  ;;  %v1404_v56 = vadd.f32 1.0, %v3523_v54 }
 0x365   :  { %v1410_v57 = vadd.f32 1.0, %v3525_v55  ;;  %v3527_v58 = vpop.eup %3526 }
 0x366   :  { %3530 = vrcp.f32 %v1404_v56  ;;  %v3529_v59 = vpop.eup %3528  ;;  %v1417_v1 = vadd.f32 1.0, %v3527_v58 }
 0x367   :  { %3532 = vrcp.f32 %v1410_v57 }
 0x368   :  { %3534 = vrcp.f32 %v1417_v1 }
 0x370   :  { %v3531_v60 = vpop.eup %3530 }
 0x371   :  { %v3533_v61 = vpop.eup %3532  ;;  %v1421_v63 = vmul.f32 %v3531_v60, %v3529_v59 }
 0x372   :  { %v1420_v2 = vmul.f32 %v3533_v61, %v4060_v35  ;;  %v3535_v4 = vpop.eup %3534  ;;  %v4181_v35 = vld [vmem:[#allocation10 + $0xc0] ss:$16 sps:$4 sm:$0xff]  }
 0x374   :  { %v4100_v3 = vadd.f32 %v1421_v63, %v1420_v2 }
 0x376   :  { %3536 = vtanh.f32 %v4100_v3 }
 0x380   :  { %v3537_v5 = vpop.eup %3536 }
 0x381   :  { %v1424_v32 = vmul.f32 %v3537_v5, %v3535_v4 }
 0x383   :  { %1426 = vst [vmem:[#allocation11 + $0x10] sm:$0xff] %v1424_v32  ;;  %v1434_v44 = vpack.c.bf16 %v1424_v32, %v1424_v32 }
 0x385   :  { %1660 = vmatmul.mubr.bf16.vlgmr.msra.gmra.mrb[28].mxu0 %v1434_v44  ;;  %1701 = vmatmul.mubr.bf16.vlgmr.msra.gmra.mrb[28].mxu1 %v1434_v44 }
 0x386   :  { %1971 = vmatprep.mubr.bf16.mxu0 %v4376_v30  ;;  %2012 = vmatprep.mubr.bf16.mxu1 %v4376_v30 }
 0x387   :  { %1940 = vmatpush1.bf16.msra.mxu0 %v4109_v8  ;;  %1981 = vmatpush1.bf16.msra.mxu1 %v4111_v12 }
 0x388   :  { %1941 = vmatprep.subr.bf16.mxu0 %v4117_v23  ;;  %1982 = vmatprep.subr.bf16.mxu1 %v4119_v31 }
 0x38b   :  { %1942 = vmatpush1.bf16.msra.mxu0 %v4121_v15  ;;  %1983 = vmatpush1.bf16.msra.mxu1 %v4123_v14 }
 0x38c   :  { %1943 = vmatprep.subr.bf16.mxu0 %v4129_v16  ;;  %1984 = vmatprep.subr.bf16.mxu1 %v4131_v18 }
 0x38f   :  { %1944 = vmatpush1.bf16.msra.mxu0 %v4133_v17  ;;  %1985 = vmatpush1.bf16.msra.mxu1 %v4135_v19 }
 0x390   :  { %1945 = vmatprep.subr.bf16.mxu0 %v4141_v0  ;;  %1986 = vmatprep.subr.bf16.mxu1 %v4143_v33 }
 0x393   :  { %1946 = vmatpush1.bf16.msra.mxu0 %v4145_v34  ;;  %1987 = vmatpush1.bf16.msra.mxu1 %v4147_v20 }
 0x394   :  { %1947 = vmatprep.subr.bf16.mxu0 %v4153_v21  ;;  %1988 = vmatprep.subr.bf16.mxu1 %v4155_v24 }
 0x397   :  { %1948 = vmatpush1.bf16.msra.mxu0 %v4157_v26  ;;  %1989 = vmatpush1.bf16.msra.mxu1 %v4159_v28 }
 0x398   :  { %1949 = vmatprep.subr.bf16.mxu0 %v4163_v27  ;;  %1990 = vmatprep.subr.bf16.mxu1 %v4171_v53 }
 0x39b   :  { %1950 = vmatpush1.bf16.msra.mxu0 %v4167_v29  ;;  %1991 = vmatpush1.bf16.msra.mxu1 %v4169_v9 }
 0x39c   :  { %1951 = vmatprep.subr.bf16.mxu0 %v4174_v25  ;;  %1992 = vmatprep.subr.bf16.mxu1 %v4176_v11 }
 0x39f   :  { %1952 = vmatpush1.bf16.msra.mxu0 %v4181_v35  ;;  %1993 = vmatpush1.bf16.msra.mxu1 %v4183_v10 }
 0x3a0   :  { %1953 = vmatprep.subr.bf16.mxu0 %v4187_v22  ;;  %1994 = vmatprep.subr.bf16.mxu1 %v4189_v13 }
 0x3a3   :  { %1954 = vmatpush1.bf16.msra.mxu0 %v4193_v6  ;;  %1995 = vmatpush1.bf16.msra.mxu1 %v4195_v36 }
 0x3a4   :  { %2251 = vmatprep.subr.bf16.mxu0 %v4105_v62  ;;  %2292 = vmatprep.subr.bf16.mxu1 %v4107_v7 }
 0x458   :  { %v1661_v37 = vpop.f32.mrb[28].mxu0  ;;  %v1702_v38 = vpop.f32.mrb[28].mxu1 }
 0x459   :  { %v1709_v40 = vadd.f32 %v1661_v37, %v4378_v39  ;;  %v1711_v42 = vadd.f32 %v1702_v38, %v4379_v41  ;;  %v1663_v43 = vpop.f32.mrb[29].mxu0  ;;  %v1704_v45 = vpop.f32.mrb[29].mxu1 }
 0x45a   :  { %v1710_v47 = vadd.f32 %v1663_v43, %v4380_v46  ;;  %v1712_v49 = vadd.f32 %v1704_v45, %v4381_v48  ;;  %v1665_v50 = vpop.f32.mrb[30].mxu0  ;;  %v1706_v51 = vpop.f32.mrb[30].mxu1  ;;  %v4382_v43 = vld [vmem:[#allocation20_spill] sm:$0xff]  ;;  %v4383_v46 = vld [vmem:[#allocation21_spill] sm:$0xff] }
 0x45b   :  { %v3187_v52 = vmul.f32 -1.442695, %v1709_v40  ;;  %v1666_v54 = vpop.f32.mrb[31].mxu0  ;;  %v1707_v55 = vpop.f32.mrb[31].mxu1  ;;  %v4384_v50 = vld [vmem:[#allocation22_spill] sm:$0xff] }
 0x45c   :  { %v3188_v56 = vmul.f32 -1.442695, %v1710_v47  ;;  %v3189_v57 = vmul.f32 -1.442695, %v1712_v49 }
 0x45d   :  { %3538 = vpow2.f32 %v3187_v52  ;;  %v4385_v52 = vld [vmem:[#allocation23_spill] sm:$0xff] }
 0x45e   :  { %3540 = vpow2.f32 %v3188_v56 }
 0x45f   :  { %3542 = vpow2.f32 %v3189_v57 }
 0x460   :  { %3544 = vtanh.f32 %v1711_v42 }
 0x467   :  { %v3539_v58 = vpop.eup %3538 }
 0x468   :  { %v3541_v59 = vpop.eup %3540  ;;  %v1716_v60 = vadd.f32 1.0, %v3539_v58 }
 0x469   :  { %v1722_v61 = vadd.f32 1.0, %v3541_v59  ;;  %v3543_v63 = vpop.eup %3542 }
 0x46a   :  { %3546 = vrcp.f32 %v1716_v60  ;;  %v3545_v1 = vpop.eup %3544  ;;  %v1729_v32 = vadd.f32 1.0, %v3543_v63 }
 0x46b   :  { %3548 = vrcp.f32 %v1722_v61 }
 0x46c   :  { %3550 = vrcp.f32 %v1729_v32 }
 0x474   :  { %v3547_v2 = vpop.eup %3546 }
 0x475   :  { %v3549_v4 = vpop.eup %3548  ;;  %v1733_v5 = vmul.f32 %v3547_v2, %v3545_v1 }
 0x476   :  { %v1732_v44 = vmul.f32 %v3549_v4, %v4100_v3  ;;  %v3551_v38 = vpop.eup %3550 }
 0x478   :  { %v4208_v37 = vadd.f32 %v1733_v5, %v1732_v44 }
 0x47a   :  { %3552 = vtanh.f32 %v4208_v37 }
 0x484   :  { %v3553_v39 = vpop.eup %3552 }
 0x485   :  { %v1736_v40 = vmul.f32 %v3553_v39, %v3551_v38 }
 0x487   :  { %1738 = vst [vmem:[#allocation11 + $0x18] sm:$0xff] %v1736_v40  ;;  %v1746_v41 = vpack.c.bf16 %v1736_v40, %v1736_v40 }
 0x489   :  { %1972 = vmatmul.mubr.bf16.vlgmr.msra.gmra.mrb[32].mxu0 %v1746_v41  ;;  %2013 = vmatmul.mubr.bf16.vlgmr.msra.gmra.mrb[32].mxu1 %v1746_v41 }
 0x48a   :  { %2252 = vmatpush1.bf16.msra.mxu0 %v4109_v8  ;;  %2293 = vmatpush1.bf16.msra.mxu1 %v4111_v12 }
 0x48b   :  { %2253 = vmatprep.subr.bf16.mxu0 %v4117_v23  ;;  %2294 = vmatprep.subr.bf16.mxu1 %v4119_v31 }
 0x48c   :  { %2283 = vmatprep.mubr.bf16.mxu0 %v4376_v30  ;;  %2324 = vmatprep.mubr.bf16.mxu1 %v4376_v30 }
 0x48e   :  { %2254 = vmatpush1.bf16.msra.mxu0 %v4121_v15  ;;  %2295 = vmatpush1.bf16.msra.mxu1 %v4123_v14 }
 0x48f   :  { %2255 = vmatprep.subr.bf16.mxu0 %v4129_v16  ;;  %2296 = vmatprep.subr.bf16.mxu1 %v4131_v18 }
 0x492   :  { %2256 = vmatpush1.bf16.msra.mxu0 %v4133_v17  ;;  %2297 = vmatpush1.bf16.msra.mxu1 %v4135_v19 }
 0x493   :  { %2257 = vmatprep.subr.bf16.mxu0 %v4141_v0  ;;  %2298 = vmatprep.subr.bf16.mxu1 %v4143_v33 }
 0x496   :  { %2258 = vmatpush1.bf16.msra.mxu0 %v4145_v34  ;;  %2299 = vmatpush1.bf16.msra.mxu1 %v4147_v20 }
 0x497   :  { %2259 = vmatprep.subr.bf16.mxu0 %v4153_v21  ;;  %2300 = vmatprep.subr.bf16.mxu1 %v4155_v24 }
 0x49a   :  { %2260 = vmatpush1.bf16.msra.mxu0 %v4157_v26  ;;  %2301 = vmatpush1.bf16.msra.mxu1 %v4159_v28 }
 0x49b   :  { %2261 = vmatprep.subr.bf16.mxu0 %v4163_v27  ;;  %2302 = vmatprep.subr.bf16.mxu1 %v4171_v53 }
 0x49e   :  { %2262 = vmatpush1.bf16.msra.mxu0 %v4167_v29  ;;  %2303 = vmatpush1.bf16.msra.mxu1 %v4169_v9 }
 0x49f   :  { %2263 = vmatprep.subr.bf16.mxu0 %v4174_v25  ;;  %2304 = vmatprep.subr.bf16.mxu1 %v4176_v11 }
 0x4a2   :  { %2264 = vmatpush1.bf16.msra.mxu0 %v4181_v35  ;;  %2305 = vmatpush1.bf16.msra.mxu1 %v4183_v10 }
 0x4a3   :  { %2265 = vmatprep.subr.bf16.mxu0 %v4187_v22  ;;  %2306 = vmatprep.subr.bf16.mxu1 %v4189_v13 }
 0x4a6   :  { %2266 = vmatpush1.bf16.msra.mxu0 %v4193_v6  ;;  %2307 = vmatpush1.bf16.msra.mxu1 %v4195_v36 }
 0x4a7   :  { %2563 = vmatprep.subr.bf16.mxu0 %v4105_v62  ;;  %2604 = vmatprep.subr.bf16.mxu1 %v4107_v7 }
 0x55c   :  { %v1973_v3 = vpop.f32.mrb[32].mxu0  ;;  %v2014_v42 = vpop.f32.mrb[32].mxu1 }
 0x55d   :  { %v2021_v45 = vadd.f32 %v1973_v3, %v4382_v43  ;;  %v2023_v47 = vadd.f32 %v2014_v42, %v4383_v46  ;;  %v1975_v48 = vpop.f32.mrb[33].mxu0  ;;  %v2016_v49 = vpop.f32.mrb[33].mxu1 }
 0x55e   :  { %v2022_v51 = vadd.f32 %v1975_v48, %v4384_v50  ;;  %v2024_v54 = vadd.f32 %v2016_v49, %v4385_v52  ;;  %v1977_v55 = vpop.f32.mrb[34].mxu0  ;;  %v2018_v56 = vpop.f32.mrb[34].mxu1  ;;  %v4386_v48 = vld [vmem:[#allocation24_spill] sm:$0xff]  ;;  %v4387_v50 = vld [vmem:[#allocation25_spill] sm:$0xff] }
 0x55f   :  { %v3222_v57 = vmul.f32 -1.442695, %v2021_v45  ;;  %v1978_v58 = vpop.f32.mrb[35].mxu0  ;;  %v2019_v59 = vpop.f32.mrb[35].mxu1  ;;  %v4388_v55 = vld [vmem:[#allocation26_spill] sm:$0xff] }
 0x560   :  { %v3223_v60 = vmul.f32 -1.442695, %v2022_v51  ;;  %v3224_v61 = vmul.f32 -1.442695, %v2024_v54 }
 0x561   :  { %3554 = vpow2.f32 %v3222_v57  ;;  %v4389_v57 = vld [vmem:[#allocation27_spill] sm:$0xff] }
 0x562   :  { %3556 = vpow2.f32 %v3223_v60 }
 0x563   :  { %3558 = vpow2.f32 %v3224_v61 }
 0x564   :  { %3560 = vtanh.f32 %v2023_v47 }
 0x56b   :  { %v3555_v63 = vpop.eup %3554 }
 0x56c   :  { %v3557_v1 = vpop.eup %3556  ;;  %v2028_v2 = vadd.f32 1.0, %v3555_v63 }
 0x56d   :  { %v2034_v4 = vadd.f32 1.0, %v3557_v1  ;;  %v3559_v5 = vpop.eup %3558 }
 0x56e   :  { %3562 = vrcp.f32 %v2028_v2  ;;  %v3561_v32 = vpop.eup %3560  ;;  %v2041_v40 = vadd.f32 1.0, %v3559_v5 }
 0x56f   :  { %3564 = vrcp.f32 %v2034_v4 }
 0x570   :  { %3566 = vrcp.f32 %v2041_v40 }
 0x578   :  { %v3563_v44 = vpop.eup %3562 }
 0x579   :  { %v3565_v38 = vpop.eup %3564  ;;  %v2045_v39 = vmul.f32 %v3563_v44, %v3561_v32 }
 0x57a   :  { %v2044_v41 = vmul.f32 %v3565_v38, %v4208_v37  ;;  %v3567_v42 = vpop.eup %3566 }
 0x57c   :  { %v4250_v3 = vadd.f32 %v2045_v39, %v2044_v41 }
 0x57e   :  { %3568 = vtanh.f32 %v4250_v3 }
 0x588   :  { %v3569_v43 = vpop.eup %3568 }
 0x589   :  { %v2048_v45 = vmul.f32 %v3569_v43, %v3567_v42 }
 0x58b   :  { %2050 = vst [vmem:[#allocation11 + $0x20] sm:$0xff] %v2048_v45  ;;  %v2058_v46 = vpack.c.bf16 %v2048_v45, %v2048_v45 }
 0x58d   :  { %2284 = vmatmul.mubr.bf16.vlgmr.msra.gmra.mrb[36].mxu0 %v2058_v46  ;;  %2325 = vmatmul.mubr.bf16.vlgmr.msra.gmra.mrb[36].mxu1 %v2058_v46 }
 0x58e   :  { %2564 = vmatpush1.bf16.msra.mxu0 %v4109_v8  ;;  %2605 = vmatpush1.bf16.msra.mxu1 %v4111_v12 }
 0x58f   :  { %2565 = vmatprep.subr.bf16.mxu0 %v4117_v23  ;;  %2606 = vmatprep.subr.bf16.mxu1 %v4119_v31 }
 0x590   :  { %2595 = vmatprep.mubr.bf16.mxu0 %v4376_v30  ;;  %2636 = vmatprep.mubr.bf16.mxu1 %v4376_v30 }
 0x592   :  { %2566 = vmatpush1.bf16.msra.mxu0 %v4121_v15  ;;  %2607 = vmatpush1.bf16.msra.mxu1 %v4123_v14 }
 0x593   :  { %2567 = vmatprep.subr.bf16.mxu0 %v4129_v16  ;;  %2608 = vmatprep.subr.bf16.mxu1 %v4131_v18 }
 0x596   :  { %2568 = vmatpush1.bf16.msra.mxu0 %v4133_v17  ;;  %2609 = vmatpush1.bf16.msra.mxu1 %v4135_v19 }
 0x597   :  { %2569 = vmatprep.subr.bf16.mxu0 %v4141_v0  ;;  %2610 = vmatprep.subr.bf16.mxu1 %v4143_v33 }
 0x59a   :  { %2570 = vmatpush1.bf16.msra.mxu0 %v4145_v34  ;;  %2611 = vmatpush1.bf16.msra.mxu1 %v4147_v20 }
 0x59b   :  { %2571 = vmatprep.subr.bf16.mxu0 %v4153_v21  ;;  %2612 = vmatprep.subr.bf16.mxu1 %v4155_v24 }
 0x59e   :  { %2572 = vmatpush1.bf16.msra.mxu0 %v4157_v26  ;;  %2613 = vmatpush1.bf16.msra.mxu1 %v4159_v28 }
 0x59f   :  { %2573 = vmatprep.subr.bf16.mxu0 %v4163_v27  ;;  %2614 = vmatprep.subr.bf16.mxu1 %v4171_v53 }
 0x5a2   :  { %2574 = vmatpush1.bf16.msra.mxu0 %v4167_v29  ;;  %2615 = vmatpush1.bf16.msra.mxu1 %v4169_v9 }
 0x5a3   :  { %2575 = vmatprep.subr.bf16.mxu0 %v4174_v25  ;;  %2616 = vmatprep.subr.bf16.mxu1 %v4176_v11 }
 0x5a6   :  { %2576 = vmatpush1.bf16.msra.mxu0 %v4181_v35  ;;  %2617 = vmatpush1.bf16.msra.mxu1 %v4183_v10 }
 0x5a7   :  { %2577 = vmatprep.subr.bf16.mxu0 %v4187_v22  ;;  %2618 = vmatprep.subr.bf16.mxu1 %v4189_v13 }
 0x5aa   :  { %2578 = vmatpush1.bf16.msra.mxu0 %v4193_v6  ;;  %2619 = vmatpush1.bf16.msra.mxu1 %v4195_v36 }
 0x5ab   :  { %2875 = vmatprep.subr.bf16.mxu0 %v4105_v62  ;;  %2916 = vmatprep.subr.bf16.mxu1 %v4107_v7 }
 0x660   :  { %v2285_v37 = vpop.f32.mrb[36].mxu0  ;;  %v2326_v47 = vpop.f32.mrb[36].mxu1 }
 0x661   :  { %v2333_v49 = vadd.f32 %v2285_v37, %v4386_v48  ;;  %v2335_v51 = vadd.f32 %v2326_v47, %v4387_v50  ;;  %v2287_v52 = vpop.f32.mrb[37].mxu0  ;;  %v2328_v54 = vpop.f32.mrb[37].mxu1 }
 0x662   :  { %v2334_v56 = vadd.f32 %v2287_v52, %v4388_v55  ;;  %v2336_v58 = vadd.f32 %v2328_v54, %v4389_v57  ;;  %v2289_v59 = vpop.f32.mrb[38].mxu0  ;;  %v2330_v60 = vpop.f32.mrb[38].mxu1  ;;  %v4394_v55 = vld [vmem:[#allocation32_spill] sm:$0xff]  ;;  %v4395_v57 = vld [vmem:[#allocation33_spill] sm:$0xff] }
 0x663   :  { %v3257_v61 = vmul.f32 -1.442695, %v2333_v49  ;;  %v2290_v63 = vpop.f32.mrb[39].mxu0  ;;  %v2331_v1 = vpop.f32.mrb[39].mxu1 }
 0x664   :  { %v3258_v62 = vmul.f32 -1.442695, %v2334_v56  ;;  %v3259_v7 = vmul.f32 -1.442695, %v2336_v58  ;;  %v4397_v1 = vld [vmem:[#allocation35_spill] sm:$0xff] }
 0x665   :  { %3570 = vpow2.f32 %v3257_v61  ;;  %v4396_v61 = vld [vmem:[#allocation34_spill] sm:$0xff] }
 0x666   :  { %3572 = vpow2.f32 %v3258_v62 }
 0x667   :  { %3574 = vpow2.f32 %v3259_v7 }
 0x668   :  { %3576 = vtanh.f32 %v2335_v51 }
 0x66f   :  { %v3571_v2 = vpop.eup %3570 }
 0x670   :  { %v3573_v4 = vpop.eup %3572  ;;  %v2340_v5 = vadd.f32 1.0, %v3571_v2 }
 0x671   :  { %v2346_v32 = vadd.f32 1.0, %v3573_v4  ;;  %v3575_v44 = vpop.eup %3574 }
 0x672   :  { %3578 = vrcp.f32 %v2340_v5  ;;  %v3577_v38 = vpop.eup %3576  ;;  %v2353_v42 = vadd.f32 1.0, %v3575_v44 }
 0x673   :  { %3580 = vrcp.f32 %v2346_v32 }
 0x674   :  { %3582 = vrcp.f32 %v2353_v42 }
 0x67c   :  { %v3579_v39 = vpop.eup %3578 }
 0x67d   :  { %v3581_v40 = vpop.eup %3580  ;;  %v2357_v41 = vmul.f32 %v3579_v39, %v3577_v38 }
 0x67e   :  { %v2356_v43 = vmul.f32 %v3581_v40, %v4250_v3  ;;  %v3583_v46 = vpop.eup %3582 }
 0x680   :  { %v4292_v45 = vadd.f32 %v2357_v41, %v2356_v43 }
 0x682   :  { %3584 = vtanh.f32 %v4292_v45 }
 0x68c   :  { %v3585_v37 = vpop.eup %3584 }
 0x68d   :  { %v2360_v47 = vmul.f32 %v3585_v37, %v3583_v46 }
 0x68f   :  { %2362 = vst [vmem:[#allocation11 + $0x28] sm:$0xff] %v2360_v47  ;;  %v2370_v48 = vpack.c.bf16 %v2360_v47, %v2360_v47 }
 0x691   :  { %2596 = vmatmul.mubr.bf16.vlgmr.msra.gmra.mrb[40].mxu0 %v2370_v48  ;;  %2637 = vmatmul.mubr.bf16.vlgmr.msra.gmra.mrb[40].mxu1 %v2370_v48 }
 0x692   :  { %2876 = vmatpush1.bf16.msra.mxu0 %v4109_v8  ;;  %2917 = vmatpush1.bf16.msra.mxu1 %v4111_v12  ;;  %v4390_v12 = vld [vmem:[#allocation28_spill] sm:$0xff] }
 0x693   :  { %2877 = vmatprep.subr.bf16.mxu0 %v4117_v23  ;;  %2918 = vmatprep.subr.bf16.mxu1 %v4119_v31  ;;  %v4391_v31 = vld [vmem:[#allocation29_spill] sm:$0xff] }
 0x694   :  { %2907 = vmatprep.mubr.bf16.mxu0 %v4376_v30  ;;  %2948 = vmatprep.mubr.bf16.mxu1 %v4376_v30 }
 0x696   :  { %2878 = vmatpush1.bf16.msra.mxu0 %v4121_v15  ;;  %2919 = vmatpush1.bf16.msra.mxu1 %v4123_v14 }
 0x697   :  { %2879 = vmatprep.subr.bf16.mxu0 %v4129_v16  ;;  %2920 = vmatprep.subr.bf16.mxu1 %v4131_v18  ;;  %v4392_v18 = vld [vmem:[#allocation30_spill] sm:$0xff] }
 0x69a   :  { %2880 = vmatpush1.bf16.msra.mxu0 %v4133_v17  ;;  %2921 = vmatpush1.bf16.msra.mxu1 %v4135_v19  ;;  %v4393_v19 = vld [vmem:[#allocation31_spill] sm:$0xff] }
 0x69b   :  { %2881 = vmatprep.subr.bf16.mxu0 %v4141_v0  ;;  %2922 = vmatprep.subr.bf16.mxu1 %v4143_v33 }
 0x69e   :  { %2882 = vmatpush1.bf16.msra.mxu0 %v4145_v34  ;;  %2923 = vmatpush1.bf16.msra.mxu1 %v4147_v20 }
 0x69f   :  { %2883 = vmatprep.subr.bf16.mxu0 %v4153_v21  ;;  %2924 = vmatprep.subr.bf16.mxu1 %v4155_v24 }
 0x6a2   :  { %2884 = vmatpush1.bf16.msra.mxu0 %v4157_v26  ;;  %2925 = vmatpush1.bf16.msra.mxu1 %v4159_v28 }
 0x6a3   :  { %2885 = vmatprep.subr.bf16.mxu0 %v4163_v27  ;;  %2926 = vmatprep.subr.bf16.mxu1 %v4171_v53 }
 0x6a6   :  { %2886 = vmatpush1.bf16.msra.mxu0 %v4167_v29  ;;  %2927 = vmatpush1.bf16.msra.mxu1 %v4169_v9 }
 0x6a7   :  { %2887 = vmatprep.subr.bf16.mxu0 %v4174_v25  ;;  %2928 = vmatprep.subr.bf16.mxu1 %v4176_v11 }
 0x6aa   :  { %2888 = vmatpush1.bf16.msra.mxu0 %v4181_v35  ;;  %2929 = vmatpush1.bf16.msra.mxu1 %v4183_v10 }
 0x6ab   :  { %2889 = vmatprep.subr.bf16.mxu0 %v4187_v22  ;;  %2930 = vmatprep.subr.bf16.mxu1 %v4189_v13 }
 0x6ae   :  { %2890 = vmatpush1.bf16.msra.mxu0 %v4193_v6  ;;  %2931 = vmatpush1.bf16.msra.mxu1 %v4195_v36 }
 0x764   :  { %v2597_v30 = vpop.f32.mrb[40].mxu0  ;;  %v2638_v8 = vpop.f32.mrb[40].mxu1 }
 0x765   :  { %v2645_v23 = vadd.f32 %v2597_v30, %v4390_v12  ;;  %v2647_v15 = vadd.f32 %v2638_v8, %v4391_v31  ;;  %v2599_v14 = vpop.f32.mrb[41].mxu0  ;;  %v2640_v16 = vpop.f32.mrb[41].mxu1 }
 0x766   :  { %v2646_v17 = vadd.f32 %v2599_v14, %v4392_v18  ;;  %v2648_v0 = vadd.f32 %v2640_v16, %v4393_v19  ;;  %v2601_v33 = vpop.f32.mrb[42].mxu0  ;;  %v2642_v34 = vpop.f32.mrb[42].mxu1 }
 0x767   :  { %v3292_v20 = vmul.f32 -1.442695, %v2645_v23  ;;  %v2602_v21 = vpop.f32.mrb[43].mxu0  ;;  %v2643_v24 = vpop.f32.mrb[43].mxu1 }
 0x768   :  { %v3293_v26 = vmul.f32 -1.442695, %v2646_v17  ;;  %v3294_v28 = vmul.f32 -1.442695, %v2648_v0 }
 0x769   :  { %3586 = vpow2.f32 %v3292_v20 }
 0x76a   :  { %3588 = vpow2.f32 %v3293_v26 }
 0x76b   :  { %3590 = vpow2.f32 %v3294_v28 }
 0x76c   :  { %3592 = vtanh.f32 %v2647_v15 }
 0x773   :  { %v3587_v27 = vpop.eup %3586 }
 0x774   :  { %v3589_v29 = vpop.eup %3588  ;;  %v2652_v9 = vadd.f32 1.0, %v3587_v27 }
 0x775   :  { %v2658_v53 = vadd.f32 1.0, %v3589_v29  ;;  %v3591_v25 = vpop.eup %3590 }
 0x776   :  { %3594 = vrcp.f32 %v2652_v9  ;;  %v3593_v11 = vpop.eup %3592  ;;  %v2665_v13 = vadd.f32 1.0, %v3591_v25 }
 0x777   :  { %3596 = vrcp.f32 %v2658_v53 }
 0x778   :  { %3598 = vrcp.f32 %v2665_v13 }
 0x780   :  { %v3595_v35 = vpop.eup %3594 }
 0x781   :  { %v3597_v10 = vpop.eup %3596  ;;  %v2669_v22 = vmul.f32 %v3595_v35, %v3593_v11 }
 0x782   :  { %v2668_v6 = vmul.f32 %v3597_v10, %v4292_v45  ;;  %v3599_v3 = vpop.eup %3598 }
 0x784   :  { %v2670_v36 = vadd.f32 %v2669_v22, %v2668_v6 }
 0x786   :  { %3600 = vtanh.f32 %v2670_v36 }
 0x790   :  { %v3601_v49 = vpop.eup %3600 }
 0x791   :  { %v2672_v50 = vmul.f32 %v3601_v49, %v3599_v3 }
 0x793   :  { %2674 = vst [vmem:[#allocation11 + $0x30] sm:$0xff] %v2672_v50  ;;  %v2682_v51 = vpack.c.bf16 %v2672_v50, %v2672_v50 }
 0x795   :  { %2908 = vmatmul.mubr.bf16.vlgmr.msra.gmra.mrb[44].mxu0 %v2682_v51  ;;  %2949 = vmatmul.mubr.bf16.vlgmr.msra.gmra.mrb[44].mxu1 %v2682_v51 }
 0x868   :  { %v2909_v52 = vpop.f32.mrb[44].mxu0  ;;  %v2950_v54 = vpop.f32.mrb[44].mxu1 }
 0x869   :  { %v2957_v56 = vadd.f32 %v2909_v52, %v4394_v55  ;;  %v2959_v58 = vadd.f32 %v2950_v54, %v4395_v57  ;;  %v2911_v59 = vpop.f32.mrb[45].mxu0  ;;  %v2952_v60 = vpop.f32.mrb[45].mxu1 }
 0x86a   :  { %v2958_v63 = vadd.f32 %v2911_v59, %v4396_v61  ;;  %v2960_v62 = vadd.f32 %v2952_v60, %v4397_v1  ;;  %v2913_v7 = vpop.f32.mrb[46].mxu0  ;;  %v2954_v2 = vpop.f32.mrb[46].mxu1 }
 0x86b   :  { %v3327_v4 = vmul.f32 -1.442695, %v2957_v56  ;;  %v2914_v5 = vpop.f32.mrb[47].mxu0  ;;  %v2955_v32 = vpop.f32.mrb[47].mxu1 }
 0x86c   :  { %v3328_v44 = vmul.f32 -1.442695, %v2958_v63  ;;  %v3329_v38 = vmul.f32 -1.442695, %v2960_v62 }
 0x86d   :  { %3602 = vpow2.f32 %v3327_v4 }
 0x86e   :  { %3604 = vpow2.f32 %v3328_v44 }
 0x86f   :  { %3606 = vpow2.f32 %v3329_v38 }
 0x870   :  { %3608 = vtanh.f32 %v2959_v58 }
 0x877   :  { %v3603_v39 = vpop.eup %3602 }
 0x878   :  { %v3605_v40 = vpop.eup %3604  ;;  %v2964_v41 = vadd.f32 1.0, %v3603_v39 }
 0x879   :  { %v2970_v42 = vadd.f32 1.0, %v3605_v40  ;;  %v3607_v43 = vpop.eup %3606 }
 0x87a   :  { %3610 = vrcp.f32 %v2964_v41  ;;  %v3609_v45 = vpop.eup %3608  ;;  %v2977_v48 = vadd.f32 1.0, %v3607_v43 }
 0x87b   :  { %3612 = vrcp.f32 %v2970_v42 }
 0x87c   :  { %3614 = vrcp.f32 %v2977_v48 }
 0x884   :  { %v3611_v46 = vpop.eup %3610 }
 0x885   :  { %v3613_v37 = vpop.eup %3612  ;;  %v2981_v47 = vmul.f32 %v3611_v46, %v3609_v45 }
 0x886   :  { %v2980_v30 = vmul.f32 %v3613_v37, %v2670_v36  ;;  %v3615_v12 = vpop.eup %3614 }
 0x888   :  { %v2982_v8 = vadd.f32 %v2981_v47, %v2980_v30 }
 0x88a   :  { %3616 = vtanh.f32 %v2982_v8 }
 0x894   :  { %v3617_v23 = vpop.eup %3616 }
 0x895   :  { %v2984_v31 = vmul.f32 %v3617_v23, %v3615_v12 }
 0x897   :  { %2986 = vst [vmem:[#allocation11 + $0x38] sm:$0xff] %v2984_v31 }
 0x898   :  { %3695 = shalt.err (!%p3692_p0)
}
 0x899   :  { %s3696_s6 = scalar_lea.hbm %s4352_s4, 1024 }
 0x89a   :  { %p3697_p1 = scmp.ne.s32.totalorder %s4352_s4, %s3696_s6  ;;  %p3700_p2 = scmp.lt.u32.totalorder %s3696_s6, %s4352_s4 }
 0x89c   :  { %p3702_p3 = pnand %p3700_p2, %p3697_p1 }
 0x89e   :  { %3705 = shalt.err (!%p3702_p3)
}
 0x89f   :  { %s3722_s11 = smov 128   ;;  %s3723_s12 = smov 8  }
 0x8a0   :  { %3000 = dma.vmem_to_hbm [thread:$0]  %s2995_s26, 1024, %s4352_s4, [#allocation7], %s3722_s11, %s3722_s11, %s3723_s12  }
 0x8a1   :  { %3710 = dma.done.wait [#allocation7], 1024  }
 0x8a2   :  { %3711 = vsyncadd [#allocation7], 4294966272 }
 0x8a3   :  { %3004 = vsyncpa [#allocation6], 1 }
 0x8a4   :  { %3005 = vsyncpa [#allocation9], 1 }
 0x8a5   :  { %3006 = vsyncpa [#allocation7], 1 }

</bundles_post_ra>
